<compile_context>
chip_gen: v5e
topology: v5e:2x2
jax: 0.10.0
libtpu: 0.0.40
codegen_flags: <defaults>
</compile_context>

<pallas_src>
import jax
import jax.numpy as jnp
from jax.experimental import pallas as pl
from jax.experimental.pallas import tpu as pltpu


def _lstm_head_kernel(x2d_ref,     # (S*B, In)  time-major, row index = t*B + b
                      wih1_ref,    # (In, 4H)
                      whh1_ref,    # (H, 4H)
                      b1_ref,      # (1, 4H)   (b_ih + b_hh, layer 1)
                      w2_ref,      # (2H, 4H)  = [wih2^T ; whh2^T] stacked
                      b2_ref,      # (1, 4H)   (b_ih + b_hh, layer 2)
                      wd1_ref,     # (H, 5)
                      bd1_ref,     # (1, 5)
                      wd2_ref,     # (5, 1)
                      bd2_ref,     # (1, 1)
                      out_ref):    # (B, 1)
    B = out_ref.shape[0]
    H = whh1_ref.shape[0]
    S = x2d_ref.shape[0] // B

    whh1 = whh1_ref[...]
    w2 = w2_ref[...]

    # Prologue: hoist the layer-1 input projection off the serial recurrence.
    # One well-shaped (S*B, In) @ (In, 4H) matmul; bias b1 folded once.
    xg1 = (jnp.dot(x2d_ref[...], wih1_ref[...],
                   preferred_element_type=jnp.float32)
           + b1_ref[...])                                   # (S*B, 4H)

    # Hoist the layer-2 bias broadcast out of the loop.
    b2b = jnp.broadcast_to(b2_ref[...], (B, 4 * H))

    def gates(g):
        # sigmoid(x) = 0.5 * tanh(0.5 * x) + 0.5  -> EUP tanh, no VALU divide.
        # Both transcendentals evaluated on the full (B, 4H) vreg, then sliced.
        s = 0.5 * jnp.tanh(0.5 * g) + 0.5
        t = jnp.tanh(g)
        i = s[:, 0 * H:1 * H]
        f = s[:, 1 * H:2 * H]
        gg = t[:, 2 * H:3 * H]
        o = s[:, 3 * H:4 * H]
        return i, f, gg, o

    h1 = c1 = h2 = c2 = jnp.zeros((B, H), jnp.float32)

    # S is static -> full unroll (gives the scheduler cross-step visibility).
    for t in range(S):
        # layer 1: only the recurrent matmul remains on the critical path.
        g1 = xg1[t * B:(t + 1) * B, :] + jnp.dot(
            h1, whh1, preferred_element_type=jnp.float32)
        i1, f1, gg1, o1 = gates(g1)
        c1 = f1 * c1 + i1 * gg1
        h1 = o1 * jnp.tanh(c1)

        # layer 2: single fused matmul  concat([h1, h2]) @ [wih2; whh2].
        # (dropout between layers is identity in eval mode)
        z = jnp.concatenate([h1, h2], axis=1)               # (B, 2H)
        g2 = jnp.dot(z, w2, preferred_element_type=jnp.float32) + b2b
        i2, f2, gg2, o2 = gates(g2)
        c2 = f2 * c2 + i2 * gg2
        h2 = o2 * jnp.tanh(c2)

    # head: dropout (identity) -> relu -> dense(H,5) -> relu -> dense(5,1)
    feat = jnp.maximum(h2, 0.0)
    d1 = (jnp.dot(feat, wd1_ref[...], preferred_element_type=jnp.float32)
          + bd1_ref[...])
    d1 = jnp.maximum(d1, 0.0)
    out = (jnp.dot(d1, wd2_ref[...], preferred_element_type=jnp.float32)
           + bd2_ref[...])
    out_ref[...] = out.astype(out_ref.dtype)


def lstm_forward(x, params):
    """x: (batch, seq, input_size) float32  ->  (batch, 1) float32."""
    B, S, In = x.shape
    # time-major, flattened: row index = t*B + b  (cheap layout plumbing in XLA)
    x2d = jnp.transpose(x, (1, 0, 2)).reshape(S * B, In)

    vmem = pl.BlockSpec(memory_space=pltpu.MemorySpace.VMEM)
    args = (
        x2d,
        params["wih1_t"], params["whh1_t"], params["b1"],
        params["w2"], params["b2"],
        params["wd1_t"], params["bd1"],
        params["wd2_t"], params["bd2"],
    )
    return pl.pallas_call(
        _lstm_head_kernel,
        out_shape=jax.ShapeDtypeStruct((B, 1), jnp.float32),
        in_specs=[vmem] * len(args),
        out_specs=vmem,
    )(*args)


def init_params(key, input_size, hidden_size):
    """Deterministic PyTorch-style init: U(-1/sqrt(H), 1/sqrt(H))."""
    H = hidden_size
    k = 1.0 / jnp.sqrt(jnp.float32(H))
    keys = jax.random.split(key, 14)

    def u(kk, shape):
        return jax.random.uniform(kk, shape, jnp.float32, -k, k)

    # layer 1
    w_ih1 = u(keys[0], (4 * H, input_size))
    w_hh1 = u(keys[1], (4 * H, H))
    b_ih1 = u(keys[2], (4 * H,))
    b_hh1 = u(keys[3], (4 * H,))
    # layer 2
    w_ih2 = u(keys[4], (4 * H, H))
    w_hh2 = u(keys[5], (4 * H, H))
    b_ih2 = u(keys[6], (4 * H,))
    b_hh2 = u(keys[7], (4 * H,))
    # firstDense: Linear(H, 5); finalDense: Linear(5, 1)
    k1 = 1.0 / jnp.sqrt(jnp.float32(H))
    wd1 = jax.random.uniform(keys[8], (5, H), jnp.float32, -k1, k1)
    bd1 = jax.random.uniform(keys[9], (5,), jnp.float32, -k1, k1)
    k2 = 1.0 / jnp.sqrt(jnp.float32(5))
    wd2 = jax.random.uniform(keys[10], (1, 5), jnp.float32, -k2, k2)
    bd2 = jax.random.uniform(keys[11], (1,), jnp.float32, -k2, k2)

    wih2_t = w_ih2.T
    whh2_t = w_hh2.T
    return {
        "wih1_t": w_ih1.T, "whh1_t": w_hh1.T, "b1": (b_ih1 + b_hh1)[None, :],
        # kept separately for the pure-JAX reference:
        "wih2_t": wih2_t, "whh2_t": whh2_t,
        # fused layer-2 weight for the kernel (stacked along the K axis):
        "w2": jnp.concatenate([wih2_t, whh2_t], axis=0),
        "b2": (b_ih2 + b_hh2)[None, :],
        "wd1_t": wd1.T, "bd1": bd1[None, :],
        "wd2_t": wd2.T, "bd2": bd2[None, :],
    }


def _reference_forward(x, p):
    """Pure-JAX reference mirroring the PyTorch forward (eval mode)."""
    B, S, In = x.shape
    H = p["whh1_t"].shape[0]

    def cell(x_t, h, c, wih_t, whh_t, b):
        g = x_t @ wih_t + h @ whh_t + b
        i = jax.nn.sigmoid(g[:, 0 * H:1 * H])
        f = jax.nn.sigmoid(g[:, 1 * H:2 * H])
        gg = jnp.tanh(g[:, 2 * H:3 * H])
        o = jax.nn.sigmoid(g[:, 3 * H:4 * H])
        c = f * c + i * gg
        return o * jnp.tanh(c), c

    h1 = c1 = h2 = c2 = jnp.zeros((B, H), jnp.float32)
    for t in range(S):
        h1, c1 = cell(x[:, t, :], h1, c1, p["wih1_t"], p["whh1_t"], p["b1"])
        h2, c2 = cell(h1, h2, c2, p["wih2_t"], p["whh2_t"], p["b2"])
    out = jnp.maximum(h2, 0.0)
    out = jnp.maximum(out @ p["wd1_t"] + p["bd1"], 0.0)
    return out @ p["wd2_t"] + p["bd2"]


if __name__ == "__main__":
    batch, seq_length, input_size, hidden_size = 2, 8, 4, 32

    key = jax.random.PRNGKey(0)
    kx, kp = jax.random.split(key)
    x = jax.random.normal(kx, (batch, seq_length, input_size), jnp.float32)
    params = init_params(kp, input_size, hidden_size)

    out = jax.block_until_ready(lstm_forward(x, params))
    ref = jax.block_until_ready(_reference_forward(x, params))

    assert out.shape == (batch, 1), out.shape
    assert jnp.allclose(out, ref, atol=1e-4, rtol=1e-4), (out, ref)
    print("KERNEL_OK")
</pallas_src>

<mosaic_0001>
module attributes {stable_mosaic.version = 11 : i64} {
  func.func @_lstm_head_kernel(%arg0: memref<16x4xf32, #tpu.memory_space<vmem>>, %arg1: memref<4x128xf32, #tpu.memory_space<vmem>>, %arg2: memref<32x128xf32, #tpu.memory_space<vmem>>, %arg3: memref<1x128xf32, #tpu.memory_space<vmem>>, %arg4: memref<64x128xf32, #tpu.memory_space<vmem>>, %arg5: memref<1x128xf32, #tpu.memory_space<vmem>>, %arg6: memref<32x5xf32, #tpu.memory_space<vmem>>, %arg7: memref<1x5xf32, #tpu.memory_space<vmem>>, %arg8: memref<5x1xf32, #tpu.memory_space<vmem>>, %arg9: memref<1x1xf32, #tpu.memory_space<vmem>>, %arg10: memref<2x1xf32, #tpu.memory_space<vmem>>) attributes {dimension_semantics = [], scalar_prefetch = 0 : i64, scratch_operands = 0 : i64, tpu.core_type = #tpu.core_type<tc>} {
    %c0 = arith.constant 0 : index
    %c0_0 = arith.constant 0 : index
    %0 = vector.load %arg2[%c0, %c0_0] : memref<32x128xf32, #tpu.memory_space<vmem>>, vector<32x128xf32>
    %c0_1 = arith.constant 0 : index
    %c0_2 = arith.constant 0 : index
    %1 = vector.load %arg4[%c0_1, %c0_2] : memref<64x128xf32, #tpu.memory_space<vmem>>, vector<64x128xf32>
    %c0_3 = arith.constant 0 : index
    %c0_4 = arith.constant 0 : index
    %2 = vector.load %arg0[%c0_3, %c0_4] : memref<16x4xf32, #tpu.memory_space<vmem>>, vector<16x4xf32>
    %c0_5 = arith.constant 0 : index
    %c0_6 = arith.constant 0 : index
    %3 = vector.load %arg1[%c0_5, %c0_6] : memref<4x128xf32, #tpu.memory_space<vmem>>, vector<4x128xf32>
    %cst = arith.constant dense<0.000000e+00> : vector<16x128xf32>
    %4 = tpu.matmul %2, %3, %cst {dimension_numbers = #tpu.dot_dimension_numbers<[1], [0], [0], [1], [0, 0, 1, 1], [], []>} : vector<16x4xf32>, vector<4x128xf32>, vector<16x128xf32> -> vector<16x128xf32>
    %c0_7 = arith.constant 0 : index
    %c0_8 = arith.constant 0 : index
    %5 = vector.load %arg3[%c0_7, %c0_8] : memref<1x128xf32, #tpu.memory_space<vmem>>, vector<1x128xf32>
    %6 = vector.broadcast %5 : vector<1x128xf32> to vector<16x128xf32>
    %7 = arith.addf %4, %6 : vector<16x128xf32>
    %c0_9 = arith.constant 0 : index
    %c0_10 = arith.constant 0 : index
    %8 = vector.load %arg5[%c0_9, %c0_10] : memref<1x128xf32, #tpu.memory_space<vmem>>, vector<1x128xf32>
    %9 = vector.shape_cast %8 : vector<1x128xf32> to vector<1x128xf32>
    %10 = vector.broadcast %9 : vector<1x128xf32> to vector<2x128xf32>
    %cst_11 = arith.constant 0.000000e+00 : f32
    %11 = vector.broadcast %cst_11 : f32 to vector<2x32xf32>
    %12 = vector.extract_strided_slice %7 {offsets = [0, 0], sizes = [2, 128], strides = [1, 1]} : vector<16x128xf32> to vector<2x128xf32>
    %cst_12 = arith.constant dense<0.000000e+00> : vector<2x128xf32>
    %13 = tpu.matmul %11, %0, %cst_12 {dimension_numbers = #tpu.dot_dimension_numbers<[1], [0], [0], [1], [0, 0, 1, 1], [], []>} : vector<2x32xf32>, vector<32x128xf32>, vector<2x128xf32> -> vector<2x128xf32>
    %14 = arith.addf %12, %13 : vector<2x128xf32>
    %cst_13 = arith.constant 5.000000e-01 : f32
    %15 = vector.broadcast %cst_13 : f32 to vector<2x128xf32>
    %16 = arith.mulf %15, %14 : vector<2x128xf32>
    %17 = math.tanh %16 : vector<2x128xf32>
    %cst_14 = arith.constant 5.000000e-01 : f32
    %18 = vector.broadcast %cst_14 : f32 to vector<2x128xf32>
    %19 = arith.mulf %18, %17 : vector<2x128xf32>
    %cst_15 = arith.constant 5.000000e-01 : f32
    %20 = vector.broadcast %cst_15 : f32 to vector<2x128xf32>
    %21 = arith.addf %19, %20 : vector<2x128xf32>
    %22 = math.tanh %14 : vector<2x128xf32>
    %23 = vector.extract_strided_slice %21 {offsets = [0, 0], sizes = [2, 32], strides = [1, 1]} : vector<2x128xf32> to vector<2x32xf32>
    %24 = vector.extract_strided_slice %21 {offsets = [0, 32], sizes = [2, 32], strides = [1, 1]} : vector<2x128xf32> to vector<2x32xf32>
    %25 = vector.extract_strided_slice %22 {offsets = [0, 64], sizes = [2, 32], strides = [1, 1]} : vector<2x128xf32> to vector<2x32xf32>
    %26 = vector.extract_strided_slice %21 {offsets = [0, 96], sizes = [2, 32], strides = [1, 1]} : vector<2x128xf32> to vector<2x32xf32>
    %27 = arith.mulf %24, %11 : vector<2x32xf32>
    %28 = arith.mulf %23, %25 : vector<2x32xf32>
    %29 = arith.addf %27, %28 : vector<2x32xf32>
    %30 = math.tanh %29 : vector<2x32xf32>
    %31 = arith.mulf %26, %30 : vector<2x32xf32>
    %32 = tpu.concatenate %31, %11 in 1 : vector<2x32xf32>, vector<2x32xf32> -> vector<2x64xf32>
    %cst_16 = arith.constant dense<0.000000e+00> : vector<2x128xf32>
    %33 = tpu.matmul %32, %1, %cst_16 {dimension_numbers = #tpu.dot_dimension_numbers<[1], [0], [0], [1], [0, 0, 1, 1], [], []>} : vector<2x64xf32>, vector<64x128xf32>, vector<2x128xf32> -> vector<2x128xf32>
    %34 = arith.addf %33, %10 : vector<2x128xf32>
    %cst_17 = arith.constant 5.000000e-01 : f32
    %35 = vector.broadcast %cst_17 : f32 to vector<2x128xf32>
    %36 = arith.mulf %35, %34 : vector<2x128xf32>
    %37 = math.tanh %36 : vector<2x128xf32>
    %cst_18 = arith.constant 5.000000e-01 : f32
    %38 = vector.broadcast %cst_18 : f32 to vector<2x128xf32>
    %39 = arith.mulf %38, %37 : vector<2x128xf32>
    %cst_19 = arith.constant 5.000000e-01 : f32
    %40 = vector.broadcast %cst_19 : f32 to vector<2x128xf32>
    %41 = arith.addf %39, %40 : vector<2x128xf32>
    %42 = math.tanh %34 : vector<2x128xf32>
    %43 = vector.extract_strided_slice %41 {offsets = [0, 0], sizes = [2, 32], strides = [1, 1]} : vector<2x128xf32> to vector<2x32xf32>
    %44 = vector.extract_strided_slice %41 {offsets = [0, 32], sizes = [2, 32], strides = [1, 1]} : vector<2x128xf32> to vector<2x32xf32>
    %45 = vector.extract_strided_slice %42 {offsets = [0, 64], sizes = [2, 32], strides = [1, 1]} : vector<2x128xf32> to vector<2x32xf32>
    %46 = vector.extract_strided_slice %41 {offsets = [0, 96], sizes = [2, 32], strides = [1, 1]} : vector<2x128xf32> to vector<2x32xf32>
    %47 = arith.mulf %44, %11 : vector<2x32xf32>
    %48 = arith.mulf %43, %45 : vector<2x32xf32>
    %49 = arith.addf %47, %48 : vector<2x32xf32>
    %50 = math.tanh %49 : vector<2x32xf32>
    %51 = arith.mulf %46, %50 : vector<2x32xf32>
    %52 = vector.extract_strided_slice %7 {offsets = [2, 0], sizes = [2, 128], strides = [1, 1]} : vector<16x128xf32> to vector<2x128xf32>
    %cst_20 = arith.constant dense<0.000000e+00> : vector<2x128xf32>
    %53 = tpu.matmul %31, %0, %cst_20 {dimension_numbers = #tpu.dot_dimension_numbers<[1], [0], [0], [1], [0, 0, 1, 1], [], []>} : vector<2x32xf32>, vector<32x128xf32>, vector<2x128xf32> -> vector<2x128xf32>
    %54 = arith.addf %52, %53 : vector<2x128xf32>
    %cst_21 = arith.constant 5.000000e-01 : f32
    %55 = vector.broadcast %cst_21 : f32 to vector<2x128xf32>
    %56 = arith.mulf %55, %54 : vector<2x128xf32>
    %57 = math.tanh %56 : vector<2x128xf32>
    %cst_22 = arith.constant 5.000000e-01 : f32
    %58 = vector.broadcast %cst_22 : f32 to vector<2x128xf32>
    %59 = arith.mulf %58, %57 : vector<2x128xf32>
    %cst_23 = arith.constant 5.000000e-01 : f32
    %60 = vector.broadcast %cst_23 : f32 to vector<2x128xf32>
    %61 = arith.addf %59, %60 : vector<2x128xf32>
    %62 = math.tanh %54 : vector<2x128xf32>
    %63 = vector.extract_strided_slice %61 {offsets = [0, 0], sizes = [2, 32], strides = [1, 1]} : vector<2x128xf32> to vector<2x32xf32>
    %64 = vector.extract_strided_slice %61 {offsets = [0, 32], sizes = [2, 32], strides = [1, 1]} : vector<2x128xf32> to vector<2x32xf32>
    %65 = vector.extract_strided_slice %62 {offsets = [0, 64], sizes = [2, 32], strides = [1, 1]} : vector<2x128xf32> to vector<2x32xf32>
    %66 = vector.extract_strided_slice %61 {offsets = [0, 96], sizes = [2, 32], strides = [1, 1]} : vector<2x128xf32> to vector<2x32xf32>
    %67 = arith.mulf %64, %29 : vector<2x32xf32>
    %68 = arith.mulf %63, %65 : vector<2x32xf32>
    %69 = arith.addf %67, %68 : vector<2x32xf32>
    %70 = math.tanh %69 : vector<2x32xf32>
    %71 = arith.mulf %66, %70 : vector<2x32xf32>
    %72 = tpu.concatenate %71, %51 in 1 : vector<2x32xf32>, vector<2x32xf32> -> vector<2x64xf32>
    %cst_24 = arith.constant dense<0.000000e+00> : vector<2x128xf32>
    %73 = tpu.matmul %72, %1, %cst_24 {dimension_numbers = #tpu.dot_dimension_numbers<[1], [0], [0], [1], [0, 0, 1, 1], [], []>} : vector<2x64xf32>, vector<64x128xf32>, vector<2x128xf32> -> vector<2x128xf32>
    %74 = arith.addf %73, %10 : vector<2x128xf32>
    %cst_25 = arith.constant 5.000000e-01 : f32
    %75 = vector.broadcast %cst_25 : f32 to vector<2x128xf32>
    %76 = arith.mulf %75, %74 : vector<2x128xf32>
    %77 = math.tanh %76 : vector<2x128xf32>
    %cst_26 = arith.constant 5.000000e-01 : f32
    %78 = vector.broadcast %cst_26 : f32 to vector<2x128xf32>
    %79 = arith.mulf %78, %77 : vector<2x128xf32>
    %cst_27 = arith.constant 5.000000e-01 : f32
    %80 = vector.broadcast %cst_27 : f32 to vector<2x128xf32>
    %81 = arith.addf %79, %80 : vector<2x128xf32>
    %82 = math.tanh %74 : vector<2x128xf32>
    %83 = vector.extract_strided_slice %81 {offsets = [0, 0], sizes = [2, 32], strides = [1, 1]} : vector<2x128xf32> to vector<2x32xf32>
    %84 = vector.extract_strided_slice %81 {offsets = [0, 32], sizes = [2, 32], strides = [1, 1]} : vector<2x128xf32> to vector<2x32xf32>
    %85 = vector.extract_strided_slice %82 {offsets = [0, 64], sizes = [2, 32], strides = [1, 1]} : vector<2x128xf32> to vector<2x32xf32>
    %86 = vector.extract_strided_slice %81 {offsets = [0, 96], sizes = [2, 32], strides = [1, 1]} : vector<2x128xf32> to vector<2x32xf32>
    %87 = arith.mulf %84, %49 : vector<2x32xf32>
    %88 = arith.mulf %83, %85 : vector<2x32xf32>
    %89 = arith.addf %87, %88 : vector<2x32xf32>
    %90 = math.tanh %89 : vector<2x32xf32>
    %91 = arith.mulf %86, %90 : vector<2x32xf32>
    %92 = vector.extract_strided_slice %7 {offsets = [4, 0], sizes = [2, 128], strides = [1, 1]} : vector<16x128xf32> to vector<2x128xf32>
    %cst_28 = arith.constant dense<0.000000e+00> : vector<2x128xf32>
    %93 = tpu.matmul %71, %0, %cst_28 {dimension_numbers = #tpu.dot_dimension_numbers<[1], [0], [0], [1], [0, 0, 1, 1], [], []>} : vector<2x32xf32>, vector<32x128xf32>, vector<2x128xf32> -> vector<2x128xf32>
    %94 = arith.addf %92, %93 : vector<2x128xf32>
    %cst_29 = arith.constant 5.000000e-01 : f32
    %95 = vector.broadcast %cst_29 : f32 to vector<2x128xf32>
    %96 = arith.mulf %95, %94 : vector<2x128xf32>
    %97 = math.tanh %96 : vector<2x128xf32>
    %cst_30 = arith.constant 5.000000e-01 : f32
    %98 = vector.broadcast %cst_30 : f32 to vector<2x128xf32>
    %99 = arith.mulf %98, %97 : vector<2x128xf32>
    %cst_31 = arith.constant 5.000000e-01 : f32
    %100 = vector.broadcast %cst_31 : f32 to vector<2x128xf32>
    %101 = arith.addf %99, %100 : vector<2x128xf32>
    %102 = math.tanh %94 : vector<2x128xf32>
    %103 = vector.extract_strided_slice %101 {offsets = [0, 0], sizes = [2, 32], strides = [1, 1]} : vector<2x128xf32> to vector<2x32xf32>
    %104 = vector.extract_strided_slice %101 {offsets = [0, 32], sizes = [2, 32], strides = [1, 1]} : vector<2x128xf32> to vector<2x32xf32>
    %105 = vector.extract_strided_slice %102 {offsets = [0, 64], sizes = [2, 32], strides = [1, 1]} : vector<2x128xf32> to vector<2x32xf32>
    %106 = vector.extract_strided_slice %101 {offsets = [0, 96], sizes = [2, 32], strides = [1, 1]} : vector<2x128xf32> to vector<2x32xf32>
    %107 = arith.mulf %104, %69 : vector<2x32xf32>
    %108 = arith.mulf %103, %105 : vector<2x32xf32>
    %109 = arith.addf %107, %108 : vector<2x32xf32>
    %110 = math.tanh %109 : vector<2x32xf32>
    %111 = arith.mulf %106, %110 : vector<2x32xf32>
    %112 = tpu.concatenate %111, %91 in 1 : vector<2x32xf32>, vector<2x32xf32> -> vector<2x64xf32>
    %cst_32 = arith.constant dense<0.000000e+00> : vector<2x128xf32>
    %113 = tpu.matmul %112, %1, %cst_32 {dimension_numbers = #tpu.dot_dimension_numbers<[1], [0], [0], [1], [0, 0, 1, 1], [], []>} : vector<2x64xf32>, vector<64x128xf32>, vector<2x128xf32> -> vector<2x128xf32>
    %114 = arith.addf %113, %10 : vector<2x128xf32>
    %cst_33 = arith.constant 5.000000e-01 : f32
    %115 = vector.broadcast %cst_33 : f32 to vector<2x128xf32>
    %116 = arith.mulf %115, %114 : vector<2x128xf32>
    %117 = math.tanh %116 : vector<2x128xf32>
    %cst_34 = arith.constant 5.000000e-01 : f32
    %118 = vector.broadcast %cst_34 : f32 to vector<2x128xf32>
    %119 = arith.mulf %118, %117 : vector<2x128xf32>
    %cst_35 = arith.constant 5.000000e-01 : f32
    %120 = vector.broadcast %cst_35 : f32 to vector<2x128xf32>
    %121 = arith.addf %119, %120 : vector<2x128xf32>
    %122 = math.tanh %114 : vector<2x128xf32>
    %123 = vector.extract_strided_slice %121 {offsets = [0, 0], sizes = [2, 32], strides = [1, 1]} : vector<2x128xf32> to vector<2x32xf32>
    %124 = vector.extract_strided_slice %121 {offsets = [0, 32], sizes = [2, 32], strides = [1, 1]} : vector<2x128xf32> to vector<2x32xf32>
    %125 = vector.extract_strided_slice %122 {offsets = [0, 64], sizes = [2, 32], strides = [1, 1]} : vector<2x128xf32> to vector<2x32xf32>
    %126 = vector.extract_strided_slice %121 {offsets = [0, 96], sizes = [2, 32], strides = [1, 1]} : vector<2x128xf32> to vector<2x32xf32>
    %127 = arith.mulf %124, %89 : vector<2x32xf32>
    %128 = arith.mulf %123, %125 : vector<2x32xf32>
    %129 = arith.addf %127, %128 : vector<2x32xf32>
    %130 = math.tanh %129 : vector<2x32xf32>
    %131 = arith.mulf %126, %130 : vector<2x32xf32>
    %132 = vector.extract_strided_slice %7 {offsets = [6, 0], sizes = [2, 128], strides = [1, 1]} : vector<16x128xf32> to vector<2x128xf32>
    %cst_36 = arith.constant dense<0.000000e+00> : vector<2x128xf32>
    %133 = tpu.matmul %111, %0, %cst_36 {dimension_numbers = #tpu.dot_dimension_numbers<[1], [0], [0], [1], [0, 0, 1, 1], [], []>} : vector<2x32xf32>, vector<32x128xf32>, vector<2x128xf32> -> vector<2x128xf32>
    %134 = arith.addf %132, %133 : vector<2x128xf32>
    %cst_37 = arith.constant 5.000000e-01 : f32
    %135 = vector.broadcast %cst_37 : f32 to vector<2x128xf32>
    %136 = arith.mulf %135, %134 : vector<2x128xf32>
    %137 = math.tanh %136 : vector<2x128xf32>
    %cst_38 = arith.constant 5.000000e-01 : f32
    %138 = vector.broadcast %cst_38 : f32 to vector<2x128xf32>
    %139 = arith.mulf %138, %137 : vector<2x128xf32>
    %cst_39 = arith.constant 5.000000e-01 : f32
    %140 = vector.broadcast %cst_39 : f32 to vector<2x128xf32>
    %141 = arith.addf %139, %140 : vector<2x128xf32>
    %142 = math.tanh %134 : vector<2x128xf32>
    %143 = vector.extract_strided_slice %141 {offsets = [0, 0], sizes = [2, 32], strides = [1, 1]} : vector<2x128xf32> to vector<2x32xf32>
    %144 = vector.extract_strided_slice %141 {offsets = [0, 32], sizes = [2, 32], strides = [1, 1]} : vector<2x128xf32> to vector<2x32xf32>
    %145 = vector.extract_strided_slice %142 {offsets = [0, 64], sizes = [2, 32], strides = [1, 1]} : vector<2x128xf32> to vector<2x32xf32>
    %146 = vector.extract_strided_slice %141 {offsets = [0, 96], sizes = [2, 32], strides = [1, 1]} : vector<2x128xf32> to vector<2x32xf32>
    %147 = arith.mulf %144, %109 : vector<2x32xf32>
    %148 = arith.mulf %143, %145 : vector<2x32xf32>
    %149 = arith.addf %147, %148 : vector<2x32xf32>
    %150 = math.tanh %149 : vector<2x32xf32>
    %151 = arith.mulf %146, %150 : vector<2x32xf32>
    %152 = tpu.concatenate %151, %131 in 1 : vector<2x32xf32>, vector<2x32xf32> -> vector<2x64xf32>
    %cst_40 = arith.constant dense<0.000000e+00> : vector<2x128xf32>
    %153 = tpu.matmul %152, %1, %cst_40 {dimension_numbers = #tpu.dot_dimension_numbers<[1], [0], [0], [1], [0, 0, 1, 1], [], []>} : vector<2x64xf32>, vector<64x128xf32>, vector<2x128xf32> -> vector<2x128xf32>
    %154 = arith.addf %153, %10 : vector<2x128xf32>
    %cst_41 = arith.constant 5.000000e-01 : f32
    %155 = vector.broadcast %cst_41 : f32 to vector<2x128xf32>
    %156 = arith.mulf %155, %154 : vector<2x128xf32>
    %157 = math.tanh %156 : vector<2x128xf32>
    %cst_42 = arith.constant 5.000000e-01 : f32
    %158 = vector.broadcast %cst_42 : f32 to vector<2x128xf32>
    %159 = arith.mulf %158, %157 : vector<2x128xf32>
    %cst_43 = arith.constant 5.000000e-01 : f32
    %160 = vector.broadcast %cst_43 : f32 to vector<2x128xf32>
    %161 = arith.addf %159, %160 : vector<2x128xf32>
    %162 = math.tanh %154 : vector<2x128xf32>
    %163 = vector.extract_strided_slice %161 {offsets = [0, 0], sizes = [2, 32], strides = [1, 1]} : vector<2x128xf32> to vector<2x32xf32>
    %164 = vector.extract_strided_slice %161 {offsets = [0, 32], sizes = [2, 32], strides = [1, 1]} : vector<2x128xf32> to vector<2x32xf32>
    %165 = vector.extract_strided_slice %162 {offsets = [0, 64], sizes = [2, 32], strides = [1, 1]} : vector<2x128xf32> to vector<2x32xf32>
    %166 = vector.extract_strided_slice %161 {offsets = [0, 96], sizes = [2, 32], strides = [1, 1]} : vector<2x128xf32> to vector<2x32xf32>
    %167 = arith.mulf %164, %129 : vector<2x32xf32>
    %168 = arith.mulf %163, %165 : vector<2x32xf32>
    %169 = arith.addf %167, %168 : vector<2x32xf32>
    %170 = math.tanh %169 : vector<2x32xf32>
    %171 = arith.mulf %166, %170 : vector<2x32xf32>
    %172 = vector.extract_strided_slice %7 {offsets = [8, 0], sizes = [2, 128], strides = [1, 1]} : vector<16x128xf32> to vector<2x128xf32>
    %cst_44 = arith.constant dense<0.000000e+00> : vector<2x128xf32>
    %173 = tpu.matmul %151, %0, %cst_44 {dimension_numbers = #tpu.dot_dimension_numbers<[1], [0], [0], [1], [0, 0, 1, 1], [], []>} : vector<2x32xf32>, vector<32x128xf32>, vector<2x128xf32> -> vector<2x128xf32>
    %174 = arith.addf %172, %173 : vector<2x128xf32>
    %cst_45 = arith.constant 5.000000e-01 : f32
    %175 = vector.broadcast %cst_45 : f32 to vector<2x128xf32>
    %176 = arith.mulf %175, %174 : vector<2x128xf32>
    %177 = math.tanh %176 : vector<2x128xf32>
    %cst_46 = arith.constant 5.000000e-01 : f32
    %178 = vector.broadcast %cst_46 : f32 to vector<2x128xf32>
    %179 = arith.mulf %178, %177 : vector<2x128xf32>
    %cst_47 = arith.constant 5.000000e-01 : f32
    %180 = vector.broadcast %cst_47 : f32 to vector<2x128xf32>
    %181 = arith.addf %179, %180 : vector<2x128xf32>
    %182 = math.tanh %174 : vector<2x128xf32>
    %183 = vector.extract_strided_slice %181 {offsets = [0, 0], sizes = [2, 32], strides = [1, 1]} : vector<2x128xf32> to vector<2x32xf32>
    %184 = vector.extract_strided_slice %181 {offsets = [0, 32], sizes = [2, 32], strides = [1, 1]} : vector<2x128xf32> to vector<2x32xf32>
    %185 = vector.extract_strided_slice %182 {offsets = [0, 64], sizes = [2, 32], strides = [1, 1]} : vector<2x128xf32> to vector<2x32xf32>
    %186 = vector.extract_strided_slice %181 {offsets = [0, 96], sizes = [2, 32], strides = [1, 1]} : vector<2x128xf32> to vector<2x32xf32>
    %187 = arith.mulf %184, %149 : vector<2x32xf32>
    %188 = arith.mulf %183, %185 : vector<2x32xf32>
    %189 = arith.addf %187, %188 : vector<2x32xf32>
    %190 = math.tanh %189 : vector<2x32xf32>
    %191 = arith.mulf %186, %190 : vector<2x32xf32>
    %192 = tpu.concatenate %191, %171 in 1 : vector<2x32xf32>, vector<2x32xf32> -> vector<2x64xf32>
    %cst_48 = arith.constant dense<0.000000e+00> : vector<2x128xf32>
    %193 = tpu.matmul %192, %1, %cst_48 {dimension_numbers = #tpu.dot_dimension_numbers<[1], [0], [0], [1], [0, 0, 1, 1], [], []>} : vector<2x64xf32>, vector<64x128xf32>, vector<2x128xf32> -> vector<2x128xf32>
    %194 = arith.addf %193, %10 : vector<2x128xf32>
    %cst_49 = arith.constant 5.000000e-01 : f32
    %195 = vector.broadcast %cst_49 : f32 to vector<2x128xf32>
    %196 = arith.mulf %195, %194 : vector<2x128xf32>
    %197 = math.tanh %196 : vector<2x128xf32>
    %cst_50 = arith.constant 5.000000e-01 : f32
    %198 = vector.broadcast %cst_50 : f32 to vector<2x128xf32>
    %199 = arith.mulf %198, %197 : vector<2x128xf32>
    %cst_51 = arith.constant 5.000000e-01 : f32
    %200 = vector.broadcast %cst_51 : f32 to vector<2x128xf32>
    %201 = arith.addf %199, %200 : vector<2x128xf32>
    %202 = math.tanh %194 : vector<2x128xf32>
    %203 = vector.extract_strided_slice %201 {offsets = [0, 0], sizes = [2, 32], strides = [1, 1]} : vector<2x128xf32> to vector<2x32xf32>
    %204 = vector.extract_strided_slice %201 {offsets = [0, 32], sizes = [2, 32], strides = [1, 1]} : vector<2x128xf32> to vector<2x32xf32>
    %205 = vector.extract_strided_slice %202 {offsets = [0, 64], sizes = [2, 32], strides = [1, 1]} : vector<2x128xf32> to vector<2x32xf32>
    %206 = vector.extract_strided_slice %201 {offsets = [0, 96], sizes = [2, 32], strides = [1, 1]} : vector<2x128xf32> to vector<2x32xf32>
    %207 = arith.mulf %204, %169 : vector<2x32xf32>
    %208 = arith.mulf %203, %205 : vector<2x32xf32>
    %209 = arith.addf %207, %208 : vector<2x32xf32>
    %210 = math.tanh %209 : vector<2x32xf32>
    %211 = arith.mulf %206, %210 : vector<2x32xf32>
    %212 = vector.extract_strided_slice %7 {offsets = [10, 0], sizes = [2, 128], strides = [1, 1]} : vector<16x128xf32> to vector<2x128xf32>
    %cst_52 = arith.constant dense<0.000000e+00> : vector<2x128xf32>
    %213 = tpu.matmul %191, %0, %cst_52 {dimension_numbers = #tpu.dot_dimension_numbers<[1], [0], [0], [1], [0, 0, 1, 1], [], []>} : vector<2x32xf32>, vector<32x128xf32>, vector<2x128xf32> -> vector<2x128xf32>
    %214 = arith.addf %212, %213 : vector<2x128xf32>
    %cst_53 = arith.constant 5.000000e-01 : f32
    %215 = vector.broadcast %cst_53 : f32 to vector<2x128xf32>
    %216 = arith.mulf %215, %214 : vector<2x128xf32>
    %217 = math.tanh %216 : vector<2x128xf32>
    %cst_54 = arith.constant 5.000000e-01 : f32
    %218 = vector.broadcast %cst_54 : f32 to vector<2x128xf32>
    %219 = arith.mulf %218, %217 : vector<2x128xf32>
    %cst_55 = arith.constant 5.000000e-01 : f32
    %220 = vector.broadcast %cst_55 : f32 to vector<2x128xf32>
    %221 = arith.addf %219, %220 : vector<2x128xf32>
    %222 = math.tanh %214 : vector<2x128xf32>
    %223 = vector.extract_strided_slice %221 {offsets = [0, 0], sizes = [2, 32], strides = [1, 1]} : vector<2x128xf32> to vector<2x32xf32>
    %224 = vector.extract_strided_slice %221 {offsets = [0, 32], sizes = [2, 32], strides = [1, 1]} : vector<2x128xf32> to vector<2x32xf32>
    %225 = vector.extract_strided_slice %222 {offsets = [0, 64], sizes = [2, 32], strides = [1, 1]} : vector<2x128xf32> to vector<2x32xf32>
    %226 = vector.extract_strided_slice %221 {offsets = [0, 96], sizes = [2, 32], strides = [1, 1]} : vector<2x128xf32> to vector<2x32xf32>
    %227 = arith.mulf %224, %189 : vector<2x32xf32>
    %228 = arith.mulf %223, %225 : vector<2x32xf32>
    %229 = arith.addf %227, %228 : vector<2x32xf32>
    %230 = math.tanh %229 : vector<2x32xf32>
    %231 = arith.mulf %226, %230 : vector<2x32xf32>
    %232 = tpu.concatenate %231, %211 in 1 : vector<2x32xf32>, vector<2x32xf32> -> vector<2x64xf32>
    %cst_56 = arith.constant dense<0.000000e+00> : vector<2x128xf32>
    %233 = tpu.matmul %232, %1, %cst_56 {dimension_numbers = #tpu.dot_dimension_numbers<[1], [0], [0], [1], [0, 0, 1, 1], [], []>} : vector<2x64xf32>, vector<64x128xf32>, vector<2x128xf32> -> vector<2x128xf32>
    %234 = arith.addf %233, %10 : vector<2x128xf32>
    %cst_57 = arith.constant 5.000000e-01 : f32
    %235 = vector.broadcast %cst_57 : f32 to vector<2x128xf32>
    %236 = arith.mulf %235, %234 : vector<2x128xf32>
    %237 = math.tanh %236 : vector<2x128xf32>
    %cst_58 = arith.constant 5.000000e-01 : f32
    %238 = vector.broadcast %cst_58 : f32 to vector<2x128xf32>
    %239 = arith.mulf %238, %237 : vector<2x128xf32>
    %cst_59 = arith.constant 5.000000e-01 : f32
    %240 = vector.broadcast %cst_59 : f32 to vector<2x128xf32>
    %241 = arith.addf %239, %240 : vector<2x128xf32>
    %242 = math.tanh %234 : vector<2x128xf32>
    %243 = vector.extract_strided_slice %241 {offsets = [0, 0], sizes = [2, 32], strides = [1, 1]} : vector<2x128xf32> to vector<2x32xf32>
    %244 = vector.extract_strided_slice %241 {offsets = [0, 32], sizes = [2, 32], strides = [1, 1]} : vector<2x128xf32> to vector<2x32xf32>
    %245 = vector.extract_strided_slice %242 {offsets = [0, 64], sizes = [2, 32], strides = [1, 1]} : vector<2x128xf32> to vector<2x32xf32>
    %246 = vector.extract_strided_slice %241 {offsets = [0, 96], sizes = [2, 32], strides = [1, 1]} : vector<2x128xf32> to vector<2x32xf32>
    %247 = arith.mulf %244, %209 : vector<2x32xf32>
    %248 = arith.mulf %243, %245 : vector<2x32xf32>
    %249 = arith.addf %247, %248 : vector<2x32xf32>
    %250 = math.tanh %249 : vector<2x32xf32>
    %251 = arith.mulf %246, %250 : vector<2x32xf32>
    %252 = vector.extract_strided_slice %7 {offsets = [12, 0], sizes = [2, 128], strides = [1, 1]} : vector<16x128xf32> to vector<2x128xf32>
    %cst_60 = arith.constant dense<0.000000e+00> : vector<2x128xf32>
    %253 = tpu.matmul %231, %0, %cst_60 {dimension_numbers = #tpu.dot_dimension_numbers<[1], [0], [0], [1], [0, 0, 1, 1], [], []>} : vector<2x32xf32>, vector<32x128xf32>, vector<2x128xf32> -> vector<2x128xf32>
    %254 = arith.addf %252, %253 : vector<2x128xf32>
    %cst_61 = arith.constant 5.000000e-01 : f32
    %255 = vector.broadcast %cst_61 : f32 to vector<2x128xf32>
    %256 = arith.mulf %255, %254 : vector<2x128xf32>
    %257 = math.tanh %256 : vector<2x128xf32>
    %cst_62 = arith.constant 5.000000e-01 : f32
    %258 = vector.broadcast %cst_62 : f32 to vector<2x128xf32>
    %259 = arith.mulf %258, %257 : vector<2x128xf32>
    %cst_63 = arith.constant 5.000000e-01 : f32
    %260 = vector.broadcast %cst_63 : f32 to vector<2x128xf32>
    %261 = arith.addf %259, %260 : vector<2x128xf32>
    %262 = math.tanh %254 : vector<2x128xf32>
    %263 = vector.extract_strided_slice %261 {offsets = [0, 0], sizes = [2, 32], strides = [1, 1]} : vector<2x128xf32> to vector<2x32xf32>
    %264 = vector.extract_strided_slice %261 {offsets = [0, 32], sizes = [2, 32], strides = [1, 1]} : vector<2x128xf32> to vector<2x32xf32>
    %265 = vector.extract_strided_slice %262 {offsets = [0, 64], sizes = [2, 32], strides = [1, 1]} : vector<2x128xf32> to vector<2x32xf32>
    %266 = vector.extract_strided_slice %261 {offsets = [0, 96], sizes = [2, 32], strides = [1, 1]} : vector<2x128xf32> to vector<2x32xf32>
    %267 = arith.mulf %264, %229 : vector<2x32xf32>
    %268 = arith.mulf %263, %265 : vector<2x32xf32>
    %269 = arith.addf %267, %268 : vector<2x32xf32>
    %270 = math.tanh %269 : vector<2x32xf32>
    %271 = arith.mulf %266, %270 : vector<2x32xf32>
    %272 = tpu.concatenate %271, %251 in 1 : vector<2x32xf32>, vector<2x32xf32> -> vector<2x64xf32>
    %cst_64 = arith.constant dense<0.000000e+00> : vector<2x128xf32>
    %273 = tpu.matmul %272, %1, %cst_64 {dimension_numbers = #tpu.dot_dimension_numbers<[1], [0], [0], [1], [0, 0, 1, 1], [], []>} : vector<2x64xf32>, vector<64x128xf32>, vector<2x128xf32> -> vector<2x128xf32>
    %274 = arith.addf %273, %10 : vector<2x128xf32>
    %cst_65 = arith.constant 5.000000e-01 : f32
    %275 = vector.broadcast %cst_65 : f32 to vector<2x128xf32>
    %276 = arith.mulf %275, %274 : vector<2x128xf32>
    %277 = math.tanh %276 : vector<2x128xf32>
    %cst_66 = arith.constant 5.000000e-01 : f32
    %278 = vector.broadcast %cst_66 : f32 to vector<2x128xf32>
    %279 = arith.mulf %278, %277 : vector<2x128xf32>
    %cst_67 = arith.constant 5.000000e-01 : f32
    %280 = vector.broadcast %cst_67 : f32 to vector<2x128xf32>
    %281 = arith.addf %279, %280 : vector<2x128xf32>
    %282 = math.tanh %274 : vector<2x128xf32>
    %283 = vector.extract_strided_slice %281 {offsets = [0, 0], sizes = [2, 32], strides = [1, 1]} : vector<2x128xf32> to vector<2x32xf32>
    %284 = vector.extract_strided_slice %281 {offsets = [0, 32], sizes = [2, 32], strides = [1, 1]} : vector<2x128xf32> to vector<2x32xf32>
    %285 = vector.extract_strided_slice %282 {offsets = [0, 64], sizes = [2, 32], strides = [1, 1]} : vector<2x128xf32> to vector<2x32xf32>
    %286 = vector.extract_strided_slice %281 {offsets = [0, 96], sizes = [2, 32], strides = [1, 1]} : vector<2x128xf32> to vector<2x32xf32>
    %287 = arith.mulf %284, %249 : vector<2x32xf32>
    %288 = arith.mulf %283, %285 : vector<2x32xf32>
    %289 = arith.addf %287, %288 : vector<2x32xf32>
    %290 = math.tanh %289 : vector<2x32xf32>
    %291 = arith.mulf %286, %290 : vector<2x32xf32>
    %292 = vector.extract_strided_slice %7 {offsets = [14, 0], sizes = [2, 128], strides = [1, 1]} : vector<16x128xf32> to vector<2x128xf32>
    %cst_68 = arith.constant dense<0.000000e+00> : vector<2x128xf32>
    %293 = tpu.matmul %271, %0, %cst_68 {dimension_numbers = #tpu.dot_dimension_numbers<[1], [0], [0], [1], [0, 0, 1, 1], [], []>} : vector<2x32xf32>, vector<32x128xf32>, vector<2x128xf32> -> vector<2x128xf32>
    %294 = arith.addf %292, %293 : vector<2x128xf32>
    %cst_69 = arith.constant 5.000000e-01 : f32
    %295 = vector.broadcast %cst_69 : f32 to vector<2x128xf32>
    %296 = arith.mulf %295, %294 : vector<2x128xf32>
    %297 = math.tanh %296 : vector<2x128xf32>
    %cst_70 = arith.constant 5.000000e-01 : f32
    %298 = vector.broadcast %cst_70 : f32 to vector<2x128xf32>
    %299 = arith.mulf %298, %297 : vector<2x128xf32>
    %cst_71 = arith.constant 5.000000e-01 : f32
    %300 = vector.broadcast %cst_71 : f32 to vector<2x128xf32>
    %301 = arith.addf %299, %300 : vector<2x128xf32>
    %302 = math.tanh %294 : vector<2x128xf32>
    %303 = vector.extract_strided_slice %301 {offsets = [0, 0], sizes = [2, 32], strides = [1, 1]} : vector<2x128xf32> to vector<2x32xf32>
    %304 = vector.extract_strided_slice %301 {offsets = [0, 32], sizes = [2, 32], strides = [1, 1]} : vector<2x128xf32> to vector<2x32xf32>
    %305 = vector.extract_strided_slice %302 {offsets = [0, 64], sizes = [2, 32], strides = [1, 1]} : vector<2x128xf32> to vector<2x32xf32>
    %306 = vector.extract_strided_slice %301 {offsets = [0, 96], sizes = [2, 32], strides = [1, 1]} : vector<2x128xf32> to vector<2x32xf32>
    %307 = arith.mulf %304, %269 : vector<2x32xf32>
    %308 = arith.mulf %303, %305 : vector<2x32xf32>
    %309 = arith.addf %307, %308 : vector<2x32xf32>
    %310 = math.tanh %309 : vector<2x32xf32>
    %311 = arith.mulf %306, %310 : vector<2x32xf32>
    %312 = tpu.concatenate %311, %291 in 1 : vector<2x32xf32>, vector<2x32xf32> -> vector<2x64xf32>
    %cst_72 = arith.constant dense<0.000000e+00> : vector<2x128xf32>
    %313 = tpu.matmul %312, %1, %cst_72 {dimension_numbers = #tpu.dot_dimension_numbers<[1], [0], [0], [1], [0, 0, 1, 1], [], []>} : vector<2x64xf32>, vector<64x128xf32>, vector<2x128xf32> -> vector<2x128xf32>
    %314 = arith.addf %313, %10 : vector<2x128xf32>
    %cst_73 = arith.constant 5.000000e-01 : f32
    %315 = vector.broadcast %cst_73 : f32 to vector<2x128xf32>
    %316 = arith.mulf %315, %314 : vector<2x128xf32>
    %317 = math.tanh %316 : vector<2x128xf32>
    %cst_74 = arith.constant 5.000000e-01 : f32
    %318 = vector.broadcast %cst_74 : f32 to vector<2x128xf32>
    %319 = arith.mulf %318, %317 : vector<2x128xf32>
    %cst_75 = arith.constant 5.000000e-01 : f32
    %320 = vector.broadcast %cst_75 : f32 to vector<2x128xf32>
    %321 = arith.addf %319, %320 : vector<2x128xf32>
    %322 = math.tanh %314 : vector<2x128xf32>
    %323 = vector.extract_strided_slice %321 {offsets = [0, 0], sizes = [2, 32], strides = [1, 1]} : vector<2x128xf32> to vector<2x32xf32>
    %324 = vector.extract_strided_slice %321 {offsets = [0, 32], sizes = [2, 32], strides = [1, 1]} : vector<2x128xf32> to vector<2x32xf32>
    %325 = vector.extract_strided_slice %322 {offsets = [0, 64], sizes = [2, 32], strides = [1, 1]} : vector<2x128xf32> to vector<2x32xf32>
    %326 = vector.extract_strided_slice %321 {offsets = [0, 96], sizes = [2, 32], strides = [1, 1]} : vector<2x128xf32> to vector<2x32xf32>
    %327 = arith.mulf %324, %289 : vector<2x32xf32>
    %328 = arith.mulf %323, %325 : vector<2x32xf32>
    %329 = arith.addf %327, %328 : vector<2x32xf32>
    %330 = math.tanh %329 : vector<2x32xf32>
    %331 = arith.mulf %326, %330 : vector<2x32xf32>
    %cst_76 = arith.constant 0.000000e+00 : f32
    %332 = vector.broadcast %cst_76 : f32 to vector<2x32xf32>
    %333 = arith.maximumf %331, %332 : vector<2x32xf32>
    %c0_77 = arith.constant 0 : index
    %c0_78 = arith.constant 0 : index
    %334 = vector.load %arg6[%c0_77, %c0_78] : memref<32x5xf32, #tpu.memory_space<vmem>>, vector<32x5xf32>
    %cst_79 = arith.constant dense<0.000000e+00> : vector<2x5xf32>
    %335 = tpu.matmul %333, %334, %cst_79 {dimension_numbers = #tpu.dot_dimension_numbers<[1], [0], [0], [1], [0, 0, 1, 1], [], []>} : vector<2x32xf32>, vector<32x5xf32>, vector<2x5xf32> -> vector<2x5xf32>
    %c0_80 = arith.constant 0 : index
    %c0_81 = arith.constant 0 : index
    %336 = vector.load %arg7[%c0_80, %c0_81] : memref<1x5xf32, #tpu.memory_space<vmem>>, vector<1x5xf32>
    %337 = vector.broadcast %336 : vector<1x5xf32> to vector<2x5xf32>
    %338 = arith.addf %335, %337 : vector<2x5xf32>
    %cst_82 = arith.constant 0.000000e+00 : f32
    %339 = vector.broadcast %cst_82 : f32 to vector<2x5xf32>
    %340 = arith.maximumf %338, %339 : vector<2x5xf32>
    %c0_83 = arith.constant 0 : index
    %c0_84 = arith.constant 0 : index
    %341 = vector.load %arg8[%c0_83, %c0_84] : memref<5x1xf32, #tpu.memory_space<vmem>>, vector<5x1xf32>
    %cst_85 = arith.constant dense<0.000000e+00> : vector<2x1xf32>
    %342 = tpu.matmul %340, %341, %cst_85 {dimension_numbers = #tpu.dot_dimension_numbers<[1], [0], [0], [1], [0, 0, 1, 1], [], []>} : vector<2x5xf32>, vector<5x1xf32>, vector<2x1xf32> -> vector<2x1xf32>
    %c0_86 = arith.constant 0 : index
    %c0_87 = arith.constant 0 : index
    %343 = vector.load %arg9[%c0_86, %c0_87] : memref<1x1xf32, #tpu.memory_space<vmem>>, vector<1x1xf32>
    %344 = vector.broadcast %343 : vector<1x1xf32> to vector<2x1xf32>
    %345 = arith.addf %342, %344 : vector<2x1xf32>
    %c0_88 = arith.constant 0 : index
    %c0_89 = arith.constant 0 : index
    %346 = vector.load %arg10[%c0_88, %c0_89] : memref<2x1xf32, #tpu.memory_space<vmem>>, vector<2x1xf32>
    tpu.vector_store %arg10[%c0_88, %c0_89], %345 {strides = array<i32>} : memref<2x1xf32, #tpu.memory_space<vmem>>, vector<2x1xf32>,
    return
  }
}

</mosaic_0001>

<bundles_post_ra>
// kernel: tpu_custom_call.1
= control target key start
LH: loop header
LB: loop body
LE: loop exit
PB: predicated region body
PF: predicated region fallthrough
CT: control target
= control target key end

     0   :  { %s1570_s0 = inlined_call_operand.vmem [shape: f32[16,4], index: 0, kind: input, shape index: {}]   ;;  %s1571_s1 = inlined_call_operand.vmem [shape: f32[4,128], index: 1, kind: input, shape index: {}]   ;;  %s1572_s2 = inlined_call_operand.vmem [shape: f32[32,128], index: 2, kind: input, shape index: {}]   ;;  %s1573_s3 = inlined_call_operand.vmem [shape: f32[1,128], index: 3, kind: input, shape index: {}]   ;;  %s1574_s4 = inlined_call_operand.hbm [shape: f32[64,128], index: 4, kind: input, shape index: {}]   ;;  %s1575_s5 = inlined_call_operand.vmem [shape: f32[1,128], index: 5, kind: input, shape index: {}]   ;;  %s1576_s6 = inlined_call_operand.vmem [shape: f32[32,5], index: 6, kind: input, shape index: {}]   ;;  %s1577_s7 = inlined_call_operand.vmem [shape: f32[1,5], index: 7, kind: input, shape index: {}]   ;;  %s1578_s8 = inlined_call_operand.vmem [shape: f32[5,1], index: 8, kind: input, shape index: {}]   ;;  %s1579_s9 = inlined_call_operand.<no memory space> [shape: f32[1,1], index: 9, kind: input, shape index: {}]   ;;  %s1580_s10 = inlined_call_operand.vmem [shape: f32[2,1], index: 10, kind: output, shape index: {}]  }
   0x1   :  { %v15_v0 = vstv %s1579_s9 }
   0x2   :  { %16 = vst [vmem:[#allocation2] sm:$0x1] %v15_v0 }
   0x3   :  { %17 = vsyncpa [#allocation4], 0  ;;  %s30_s17 = sshll.u32 %s1574_s4, 4  ;;  %s1195_s18 = smov [#allocation3]   ;;  %s31_s17 = int_to_ptr.hbm [resolvable:$true] %s30_s17 }
   0x4   :  { %s32_s19 = sshll.u32 %s1195_s18, 4  ;;  %s1196_s20 = smov 128   ;;  %s33_s19 = int_to_ptr.vmem [resolvable:$true] %s32_s19 }
   0x5   :  { %s1197_s21 = smov 8  }
   0x6   :  { %38 = dma.hbm_to_vmem [thread:$0]  %s31_s17, 1024, %s33_s19, [#allocation4], %s1196_s20, %s1196_s20, %s1197_s21  }
   0x7   :  { %1193 = dma.done.wait [#allocation4], 1024  }
   0x8   :  { %1194 = vsyncadd [#allocation4], 4294966272  ;;  %vm79_vm0 = vcmask 1043456   ;;  %vm72_vm1 = vcmask 31744   ;;  %v1265_v1 = vld [vmem:[%s1572_s2 + $0x18] sm:$0xff]  ;;  %v1270_v2 = vld [vmem:[%s1572_s2 + $0x10] sm:$0xff] }
   0x9   :  { %v67_v3 = vld [vmem:[%s1571_s1] sm:$0xf]  ;;  %126 = vmatpush.msra.mxu1 %v1265_v1  ;;  %v1282_v5 = vld [vmem:[%s1572_s2 + $0x8] sm:$0xff]  ;;  %222 = vmatpush.msra.mxu3 %v1265_v1  ;;  %v1198_v7 = vmov 0.0   ;;  %s1199_s12 = smov 64   ;;  %v1322_v25 = vld [vmem:[#allocation3 + $0x30] sm:$0xff] }
   0xa   :  { %1042 = vmatpush.msk.msra.mxu0 %vm79_vm0, %v67_v3  ;;  %v65_v4 = vld [vmem:[%s1570_s0] sm:$0xff]  ;;  %v1326_v26 = vld [vmem:[#allocation3 + $0x28] sm:$0xff]  ;;  %v1341_v29 = vld [vmem:[#allocation3 + $0x10] sm:$0xff]  ;;  %vm110_vm2 = vcmask 261120   ;;  %vm162_vm3 = vcmask 523264   ;;  %vm1011_vm4 = vcmask 1044480  }
   0xb   :  { %1043 = vmatmul.msk.f32.vlgmr.msra.gmra.mxu0 %vm72_vm1, %v65_v4  ;;  %127 = vmatpush.msra.mxu1 %v1270_v2  ;;  %v1290_v6 = vld [vmem:[%s1572_s2] sm:$0xff]  ;;  %v1346_v30 = vld [vmem:[#allocation3 + $0x8] sm:$0xff]  ;;  %vm1007_vm5 = vcmask 39936   ;;  %vm1035_vm6 = vcmask 1024  }
   0xc   :  { %223 = vmatpush.msra.mxu3 %v1270_v2  ;;  %v1308_v8 = vld [vmem:[%s1573_s3] ss:$0 sm:$0xff]  ;;  %s1200_s3 = smov 32   ;;  %v1331_v27 = vld [vmem:[#allocation3 + $0x20] sm:$0xff] }
   0xd   :  { %128 = vmatpush.msra.mxu1 %v1282_v5  ;;  %v1320_v24 = vld [vmem:[#allocation3 + $0x38] sm:$0xff]  ;;  %v1356_v33 = vld [vmem:[#allocation3] sm:$0xff] }
   0xe   :  { %224 = vmatpush.msra.mxu3 %v1282_v5  ;;  %174 = vmatpush.msra.mxu2 %v1320_v24  ;;  %v1336_v28 = vld [vmem:[#allocation3 + $0x18] sm:$0xff] }
   0xf   :  { %129 = vmatpush.msra.mxu1 %v1290_v6  ;;  %281 = vmatpush.msrb.mxu0 %v1320_v24  ;;  %v1387_v36 = vld [vmem:[%s1575_s5] ss:$0 sm:$0xff] }
  0x10   :  { %130 = vmatmul.f32.vlgmr.msra.gmra.mxu1 %v1198_v7  ;;  %225 = vmatpush.msra.mxu3 %v1290_v6 }
  0x11   :  { %332 = vmatpush.msrb.mxu1 %v1265_v1  ;;  %175 = vmatpush.msra.mxu2 %v1322_v25 }
  0x12   :  { %391 = vmatpush.msrb.mxu3 %v1320_v24  ;;  %282 = vmatpush.msrb.mxu0 %v1322_v25 }
  0x13   :  { %333 = vmatpush.msrb.mxu1 %v1270_v2  ;;  %176 = vmatpush.msra.mxu2 %v1326_v26 }
  0x14   :  { %392 = vmatpush.msrb.mxu3 %v1322_v25  ;;  %283 = vmatpush.msrb.mxu0 %v1326_v26 }
  0x15   :  { %334 = vmatpush.msrb.mxu1 %v1282_v5  ;;  %177 = vmatpush.msra.mxu2 %v1331_v27 }
  0x16   :  { %393 = vmatpush.msrb.mxu3 %v1326_v26  ;;  %284 = vmatpush.msrb.mxu0 %v1331_v27 }
  0x17   :  { %335 = vmatpush.msrb.mxu1 %v1290_v6  ;;  %178 = vmatpush.msra.mxu2 %v1336_v28 }
  0x18   :  { %394 = vmatpush.msrb.mxu3 %v1331_v27  ;;  %285 = vmatpush.msrb.mxu0 %v1336_v28 }
  0x19   :  { %442 = vmatpush.msra.mxu1 %v1265_v1  ;;  %179 = vmatpush.msra.mxu2 %v1341_v29 }
  0x1a   :  { %395 = vmatpush.msrb.mxu3 %v1336_v28  ;;  %286 = vmatpush.msrb.mxu0 %v1341_v29 }
  0x1b   :  { %443 = vmatpush.msra.mxu1 %v1270_v2  ;;  %180 = vmatpush.msra.mxu2 %v1346_v30 }
  0x1c   :  { %396 = vmatpush.msrb.mxu3 %v1341_v29  ;;  %287 = vmatpush.msrb.mxu0 %v1346_v30 }
  0x1d   :  { %444 = vmatpush.msra.mxu1 %v1282_v5  ;;  %181 = vmatpush.msra.mxu2 %v1356_v33 }
  0x1e   :  { %397 = vmatpush.msrb.mxu3 %v1346_v30  ;;  %288 = vmatpush.msrb.mxu0 %v1356_v33 }
  0x1f   :  { %445 = vmatpush.msra.mxu1 %v1290_v6  ;;  %501 = vmatpush.msrb.mxu2 %v1320_v24 }
  0x20   :  { %398 = vmatpush.msrb.mxu3 %v1356_v33  ;;  %552 = vmatpush.msra.mxu0 %v1265_v1 }
  0x21   :  { %502 = vmatpush.msrb.mxu2 %v1322_v25 }
  0x22   :  { %553 = vmatpush.msra.mxu0 %v1270_v2 }
  0x23   :  { %503 = vmatpush.msrb.mxu2 %v1326_v26 }
  0x24   :  { %554 = vmatpush.msra.mxu0 %v1282_v5 }
  0x25   :  { %504 = vmatpush.msrb.mxu2 %v1331_v27 }
  0x26   :  { %555 = vmatpush.msra.mxu0 %v1290_v6 }
  0x27   :  { %505 = vmatpush.msrb.mxu2 %v1336_v28 }
  0x29   :  { %506 = vmatpush.msrb.mxu2 %v1341_v29 }
  0x2b   :  { %507 = vmatpush.msrb.mxu2 %v1346_v30 }
  0x2d   :  { %508 = vmatpush.msrb.mxu2 %v1356_v33 }
  0x88   :  { %v100_v9 = vpop.f32.mrf.mxu0 }
  0x89   :  { %v1311_v10 = vadd.f32 %v1308_v8, %v100_v9 }
  0x8d   :  { %v131_v11 = vpop.f32.mrf.mxu1 }
  0x8e   :  { %v134_v12 = vadd.f32 %v131_v11, %v1311_v10 }
  0x90   :  { %1073 = vtanh.f32 %v134_v12  ;;  %v135_v14 = vmul.f32 0.5, %v134_v12 }
  0x92   :  { %1075 = vtanh.f32 %v135_v14 }
  0x96   :  { %v1074_v13 = vpop.eup %1073 }
  0x97   :  { %142 = vrot.lane.b32.xlu0 %v1074_v13, %s1199_s12  ;;  %v66_v13 = vld [vmem:[%s1570_s0 + $0x8] sm:$0xff] }
  0x98   :  { %v1076_v15 = vpop.eup %1075  ;;  %1044 = vmatmul.msk.f32.gmra.mxu0 %vm72_vm1, %v66_v13 }
  0x99   :  { %v137_v16 = vmul.f32 0.5, %v1076_v15 }
  0x9b   :  { %v138_v17 = vadd.f32 0.5, %v137_v16 }
  0x9d   :  { %v140_v20 = vmul.f32 0.0, %v138_v17 }
 0x109   :  { %v143_v18 = vpop.permute.xlu0 %142 }
 0x10a   :  { %v145_v19 = vmul.f32 %v143_v18, %v138_v17 }
 0x10c   :  { %147 = vrot.lane.b32.xlu0 %v145_v19, %s1200_s3 }
 0x115   :  { %v1430_v19 = vpop.f32.mrf.mxu0 }
 0x17e   :  { %v148_v21 = vpop.permute.xlu0 %147 }
 0x17f   :  { %v1316_v22 = vadd.f32 %v148_v21, %v140_v20 }
 0x181   :  { %1077 = vtanh.f32 %v1316_v22  ;;  %v240_v59 = vrot.slane %v1316_v22, 6 }
 0x187   :  { %v1078_v23 = vpop.eup %1077 }
 0x188   :  { %153 = vrot.lane.b32.xlu1 %v1078_v23, %s1199_s12 }
 0x1fa   :  { %v154_v31 = vpop.permute.xlu1 %153 }
 0x1fb   :  { %v156_v32 = vmul.f32 %v154_v31, %v138_v17 }
 0x1fd   :  { %158 = vrot.lane.b32.xlu1 %v156_v32, %s1200_s3 }
 0x26f   :  { %v159_v34 = vpop.permute.xlu1 %158 }
 0x270   :  { %1046 = vmatmul.msk.f32.vlgmr.msra.gmra.mxu3 %vm110_vm2, %v159_v34  ;;  %v161_v35 = vsel %vm110_vm2, %v159_v34, 0.0 }
 0x271   :  { %1045 = vmatmul.msk.f32.vlgmr.msra.gmra.mxu2 %vm162_vm3, %v161_v35  ;;  %654 = vmatpush.msra.mxu3 %v1265_v1 }
 0x272   :  { %764 = vmatpush.msra.mxu2 %v1265_v1 }
 0x273   :  { %655 = vmatpush.msra.mxu3 %v1270_v2 }
 0x274   :  { %765 = vmatpush.msra.mxu2 %v1270_v2 }
 0x275   :  { %656 = vmatpush.msra.mxu3 %v1282_v5 }
 0x276   :  { %766 = vmatpush.msra.mxu2 %v1282_v5 }
 0x277   :  { %657 = vmatpush.msra.mxu3 %v1290_v6 }
 0x278   :  { %767 = vmatpush.msra.mxu2 %v1290_v6 }
 0x2f3   :  { %v227_v37 = vpop.f32.mrf.mxu3 }
 0x2f4   :  { %v183_v38 = vpop.f32.mrf.mxu2  ;;  %v231_v40 = vrot.slane %v227_v37, 6 }
 0x2f5   :  { %v184_v39 = vadd.f32 %v1387_v36, %v183_v38 }
 0x2f6   :  { %v233_v41 = vadd.f32 %v231_v40, %v1311_v10 }
 0x2f7   :  { %1079 = vtanh.f32 %v184_v39  ;;  %v186_v44 = vmul.f32 0.5, %v184_v39 }
 0x2f8   :  { %1081 = vtanh.f32 %v233_v41  ;;  %v234_v45 = vmul.f32 0.5, %v233_v41 }
 0x2f9   :  { %1083 = vtanh.f32 %v186_v44 }
 0x2fa   :  { %1085 = vtanh.f32 %v234_v45 }
 0x2fd   :  { %v1080_v42 = vpop.eup %1079 }
 0x2fe   :  { %193 = vrot.lane.b32.xlu2 %v1080_v42, %s1199_s12  ;;  %v1082_v43 = vpop.eup %1081 }
 0x2ff   :  { %v1084_v46 = vpop.eup %1083 }
 0x300   :  { %v188_v47 = vmul.f32 0.5, %v1084_v46  ;;  %v1086_v49 = vpop.eup %1085 }
 0x301   :  { %v236_v52 = vmul.f32 0.5, %v1086_v49 }
 0x302   :  { %v189_v48 = vadd.f32 0.5, %v188_v47 }
 0x303   :  { %v237_v53 = vadd.f32 0.5, %v236_v52 }
 0x304   :  { %v191_v56 = vmul.f32 0.0, %v189_v48 }
 0x305   :  { %v242_v60 = vmul.f32 %v240_v59, %v237_v53 }
 0x306   :  { %244 = vrot.lane.b32.xlu2 %v1082_v43, %s1199_s12 }
 0x358   :  { %v194_v50 = vpop.permute.xlu2 %193 }
 0x359   :  { %v196_v51 = vmul.f32 %v194_v50, %v189_v48 }
 0x35b   :  { %198 = vrot.lane.b32.xlu0 %v196_v51, %s1200_s3 }
 0x360   :  { %v245_v54 = vpop.permute.xlu2 %244 }
 0x361   :  { %v247_v55 = vmul.f32 %v245_v54, %v237_v53 }
 0x363   :  { %249 = vrot.lane.b32.xlu1 %v247_v55, %s1200_s3 }
 0x3cd   :  { %v199_v57 = vpop.permute.xlu0 %198 }
 0x3ce   :  { %v1395_v58 = vadd.f32 %v199_v57, %v191_v56 }
 0x3d0   :  { %1087 = vtanh.f32 %v1395_v58 }
 0x3d5   :  { %v250_v61 = vpop.permute.xlu1 %249 }
 0x3d6   :  { %v1088_v62 = vpop.eup %1087  ;;  %v1399_v63 = vadd.f32 %v250_v61, %v242_v60 }
 0x3d7   :  { %204 = vrot.lane.b32.xlu2 %v1088_v62, %s1199_s12 }
 0x3d8   :  { %1089 = vtanh.f32 %v1399_v63 }
 0x3de   :  { %v1090_v0 = vpop.eup %1089 }
 0x3df   :  { %255 = vrot.lane.b32.xlu0 %v1090_v0, %s1199_s12 }
 0x431   :  { %v205_v3 = vpop.permute.xlu2 %204 }
 0x432   :  { %v207_v4 = vmul.f32 %v205_v3, %v189_v48  ;;  %v350_v48 = vrot.slane %v1399_v63, 6 }
 0x434   :  { %v264_v7 = vrot.slane %v207_v4, 6 }
 0x436   :  { %265 = vrot.lane.b32.xlu2 %v264_v7, %s1199_s12 }
 0x451   :  { %v256_v9 = vpop.permute.xlu0 %255 }
 0x452   :  { %v258_v11 = vmul.f32 %v256_v9, %v237_v53 }
 0x454   :  { %v315_v12 = vrot.slane %v258_v11, 2  ;;  %260 = vrot.lane.b32.xlu1 %v258_v11, %s1200_s3 }
 0x456   :  { %316 = vrot.lane.b32.xlu0 %v315_v12, %s1200_s3 }
 0x490   :  { %v266_v14 = vpop.permute.xlu2 %265 }
 0x4c6   :  { %v261_v15 = vpop.permute.xlu1 %260 }
 0x4c7   :  { %v268_v16 = vsel %vm110_vm2, %v261_v15, %v266_v14 }
 0x4c8   :  { %v270_v17 = vrot.slane %v268_v16, 2  ;;  %v317_v18 = vpop.permute.xlu0 %316 }
 0x4c9   :  { %1048 = vmatmul.msk.f32.vlgmr.msrb.gmra.mxu1 %vm110_vm2, %v317_v18 }
 0x4ca   :  { %1047 = vmatmul.msk.f32.vlgmr.msrb.gmra.mxu0 %vm162_vm3, %v270_v17  ;;  %606 = vmatpush.msrb.mxu1 %v1320_v24 }
 0x4cb   :  { %713 = vmatpush.msrb.mxu0 %v1320_v24 }
 0x4cc   :  { %607 = vmatpush.msrb.mxu1 %v1322_v25 }
 0x4cd   :  { %714 = vmatpush.msrb.mxu0 %v1322_v25 }
 0x4ce   :  { %608 = vmatpush.msrb.mxu1 %v1326_v26 }
 0x4cf   :  { %715 = vmatpush.msrb.mxu0 %v1326_v26 }
 0x4d0   :  { %609 = vmatpush.msrb.mxu1 %v1331_v27 }
 0x4d1   :  { %716 = vmatpush.msrb.mxu0 %v1331_v27 }
 0x4d2   :  { %610 = vmatpush.msrb.mxu1 %v1336_v28 }
 0x4d3   :  { %717 = vmatpush.msrb.mxu0 %v1336_v28 }
 0x4d4   :  { %611 = vmatpush.msrb.mxu1 %v1341_v29 }
 0x4d5   :  { %718 = vmatpush.msrb.mxu0 %v1341_v29 }
 0x4d6   :  { %612 = vmatpush.msrb.mxu1 %v1346_v30 }
 0x4d7   :  { %719 = vmatpush.msrb.mxu0 %v1346_v30 }
 0x4d8   :  { %613 = vmatpush.msrb.mxu1 %v1356_v33 }
 0x4d9   :  { %720 = vmatpush.msrb.mxu0 %v1356_v33 }
 0x546   :  { %v337_v20 = vpop.f32.mrf.mxu1 }
 0x547   :  { %v341_v21 = vrot.slane %v337_v20, 4  ;;  %v290_v22 = vpop.f32.mrf.mxu0 }
 0x548   :  { %v291_v23 = vadd.f32 %v1387_v36, %v290_v22 }
 0x549   :  { %v343_v31 = vadd.f32 %v341_v21, %v1311_v10 }
 0x54a   :  { %1091 = vtanh.f32 %v291_v23  ;;  %v293_v42 = vmul.f32 0.5, %v291_v23 }
 0x54b   :  { %1093 = vtanh.f32 %v343_v31  ;;  %v344_v35 = vmul.f32 0.5, %v343_v31 }
 0x54d   :  { %1095 = vtanh.f32 %v344_v35 }
 0x54e   :  { %1097 = vtanh.f32 %v293_v42 }
 0x550   :  { %v1092_v32 = vpop.eup %1091 }
 0x551   :  { %v1094_v34 = vpop.eup %1093  ;;  %300 = vrot.lane.b32.xlu1 %v1092_v32, %s1199_s12 }
 0x552   :  { %354 = vrot.lane.b32.xlu2 %v1094_v34, %s1199_s12 }
 0x553   :  { %v1096_v37 = vpop.eup %1095 }
 0x554   :  { %v346_v38 = vmul.f32 0.5, %v1096_v37  ;;  %v1098_v43 = vpop.eup %1097 }
 0x555   :  { %v295_v44 = vmul.f32 0.5, %v1098_v43 }
 0x556   :  { %v347_v39 = vadd.f32 0.5, %v346_v38 }
 0x557   :  { %v296_v45 = vadd.f32 0.5, %v295_v44 }
 0x558   :  { %v352_v49 = vmul.f32 %v350_v48, %v347_v39 }
 0x559   :  { %v298_v53 = vmul.f32 %v296_v45, %v1395_v58 }
 0x5ac   :  { %v355_v40 = vpop.permute.xlu2 %354 }
 0x5ad   :  { %v357_v41 = vmul.f32 %v355_v40, %v347_v39 }
 0x5af   :  { %359 = vrot.lane.b32.xlu1 %v357_v41, %s1200_s3 }
 0x5c3   :  { %v301_v46 = vpop.permute.xlu1 %300 }
 0x5c4   :  { %v303_v47 = vmul.f32 %v301_v46, %v296_v45 }
 0x5c6   :  { %305 = vrot.lane.b32.xlu0 %v303_v47, %s1200_s3 }
 0x621   :  { %v360_v50 = vpop.permute.xlu1 %359 }
 0x622   :  { %v1439_v51 = vadd.f32 %v360_v50, %v352_v49 }
 0x624   :  { %1099 = vtanh.f32 %v1439_v51  ;;  %v460_v38 = vrot.slane %v1439_v51, 6 }
 0x62a   :  { %v1100_v52 = vpop.eup %1099 }
 0x62b   :  { %365 = vrot.lane.b32.xlu0 %v1100_v52, %s1199_s12 }
 0x638   :  { %v306_v54 = vpop.permute.xlu0 %305 }
 0x639   :  { %v308_v55 = vadd.f32 %v306_v54, %v298_v53  ;;  %v1488_v54 = vadd.f32 %v1308_v8, %v1430_v19 }
 0x63b   :  { %1101 = vtanh.f32 %v308_v55 }
 0x641   :  { %v1102_v56 = vpop.eup %1101 }
 0x642   :  { %311 = vrot.lane.b32.xlu2 %v1102_v56, %s1199_s12 }
 0x69c   :  { %v312_v57 = vpop.permute.xlu2 %311 }
 0x69d   :  { %v314_v59 = vmul.f32 %v312_v57, %v296_v45  ;;  %v366_v60 = vpop.permute.xlu0 %365 }
 0x69e   :  { %v368_v61 = vmul.f32 %v366_v60, %v347_v39 }
 0x69f   :  { %v374_v62 = vrot.slane %v314_v59, 4 }
 0x6a0   :  { %v425_v63 = vrot.slane %v368_v61, 4  ;;  %370 = vrot.lane.b32.xlu1 %v368_v61, %s1200_s3 }
 0x6a1   :  { %375 = vrot.lane.b32.xlu2 %v374_v62, %s1199_s12 }
 0x6a2   :  { %426 = vrot.lane.b32.xlu0 %v425_v63, %s1200_s3 }
 0x6fb   :  { %v376_v0 = vpop.permute.xlu2 %375 }
 0x712   :  { %v371_v58 = vpop.permute.xlu1 %370 }
 0x713   :  { %v378_v3 = vsel %vm110_vm2, %v371_v58, %v376_v0 }
 0x714   :  { %v380_v4 = vrot.slane %v378_v3, 4  ;;  %v427_v7 = vpop.permute.xlu0 %426 }
 0x715   :  { %1050 = vmatmul.msk.f32.vlgmr.msra.gmra.mxu1 %vm110_vm2, %v427_v7 }
 0x716   :  { %1049 = vmatmul.msk.f32.vlgmr.msrb.gmra.mxu3 %vm162_vm3, %v380_v4  ;;  %874 = vmatpush.msra.mxu1 %v1265_v1 }
 0x717   :  { %823 = vmatpush.msrb.mxu3 %v1320_v24 }
 0x718   :  { %875 = vmatpush.msra.mxu1 %v1270_v2 }
 0x719   :  { %824 = vmatpush.msrb.mxu3 %v1322_v25 }
 0x71a   :  { %876 = vmatpush.msra.mxu1 %v1282_v5 }
 0x71b   :  { %825 = vmatpush.msrb.mxu3 %v1326_v26 }
 0x71c   :  { %877 = vmatpush.msra.mxu1 %v1290_v6 }
 0x71d   :  { %826 = vmatpush.msrb.mxu3 %v1331_v27 }
 0x71f   :  { %827 = vmatpush.msrb.mxu3 %v1336_v28 }
 0x721   :  { %828 = vmatpush.msrb.mxu3 %v1341_v29 }
 0x723   :  { %829 = vmatpush.msrb.mxu3 %v1346_v30 }
 0x725   :  { %830 = vmatpush.msrb.mxu3 %v1356_v33 }
 0x792   :  { %v447_v1 = vpop.f32.mrf.mxu1 }
 0x793   :  { %v451_v2 = vrot.slane %v447_v1, 2 }
 0x795   :  { %v453_v9 = vadd.f32 %v451_v2, %v1311_v10 }
 0x797   :  { %1103 = vtanh.f32 %v453_v9  ;;  %v454_v18 = vmul.f32 0.5, %v453_v9 }
 0x799   :  { %v400_v5 = vpop.f32.mrf.mxu3 }
 0x79a   :  { %v401_v11 = vadd.f32 %v1387_v36, %v400_v5 }
 0x79c   :  { %1105 = vtanh.f32 %v401_v11  ;;  %v403_v13 = vmul.f32 0.5, %v401_v11 }
 0x79d   :  { %v1104_v6 = vpop.eup %1103 }
 0x79e   :  { %464 = vrot.lane.b32.xlu1 %v1104_v6, %s1199_s12  ;;  %1107 = vtanh.f32 %v403_v13 }
 0x79f   :  { %1109 = vtanh.f32 %v454_v18 }
 0x7a2   :  { %v1106_v12 = vpop.eup %1105 }
 0x7a3   :  { %410 = vrot.lane.b32.xlu2 %v1106_v12, %s1199_s12 }
 0x7a4   :  { %v1108_v14 = vpop.eup %1107 }
 0x7a5   :  { %v405_v15 = vmul.f32 0.5, %v1108_v14  ;;  %v1110_v10 = vpop.eup %1109 }
 0x7a6   :  { %v456_v21 = vmul.f32 0.5, %v1110_v10 }
 0x7a7   :  { %v406_v16 = vadd.f32 0.5, %v405_v15 }
 0x7a8   :  { %v457_v22 = vadd.f32 0.5, %v456_v21 }
 0x7a9   :  { %v408_v32 = vmul.f32 %v406_v16, %v308_v55 }
 0x7aa   :  { %v462_v39 = vmul.f32 %v460_v38, %v457_v22 }
 0x7fd   :  { %v411_v17 = vpop.permute.xlu2 %410 }
 0x7fe   :  { %v413_v20 = vmul.f32 %v411_v17, %v406_v16 }
 0x800   :  { %415 = vrot.lane.b32.xlu1 %v413_v20, %s1200_s3 }
 0x810   :  { %v465_v23 = vpop.permute.xlu1 %464 }
 0x811   :  { %v467_v31 = vmul.f32 %v465_v23, %v457_v22 }
 0x813   :  { %469 = vrot.lane.b32.xlu0 %v467_v31, %s1200_s3 }
 0x872   :  { %v416_v34 = vpop.permute.xlu1 %415 }
 0x873   :  { %v418_v35 = vadd.f32 %v416_v34, %v408_v32 }
 0x875   :  { %1111 = vtanh.f32 %v418_v35 }
 0x87b   :  { %v1112_v37 = vpop.eup %1111 }
 0x87c   :  { %421 = vrot.lane.b32.xlu0 %v1112_v37, %s1199_s12 }
 0x885   :  { %v470_v40 = vpop.permute.xlu0 %469 }
 0x886   :  { %v472_v41 = vadd.f32 %v470_v40, %v462_v39 }
 0x888   :  { %1113 = vtanh.f32 %v472_v41  ;;  %v567_v4 = vrot.slane %v472_v41, 6 }
 0x88e   :  { %v1114_v42 = vpop.eup %1113 }
 0x88f   :  { %475 = vrot.lane.b32.xlu2 %v1114_v42, %s1199_s12 }
 0x8e9   :  { %v476_v43 = vpop.permute.xlu2 %475 }
 0x8ea   :  { %v478_v44 = vmul.f32 %v476_v43, %v457_v22 }
 0x8ec   :  { %v535_v45 = vrot.slane %v478_v44, 6  ;;  %480 = vrot.lane.b32.xlu2 %v478_v44, %s1200_s3 }
 0x8ee   :  { %536 = vrot.lane.b32.xlu1 %v535_v45, %s1200_s3  ;;  %v422_v46 = vpop.permute.xlu0 %421 }
 0x8ef   :  { %v424_v47 = vmul.f32 %v422_v46, %v406_v16 }
 0x8f1   :  { %v484_v48 = vrot.slane %v424_v47, 2 }
 0x8f3   :  { %485 = vrot.lane.b32.xlu0 %v484_v48, %s1199_s12 }
 0x946   :  { %v481_v50 = vpop.permute.xlu2 %480 }
 0x960   :  { %v537_v49 = vpop.permute.xlu1 %536 }
 0x961   :  { %1052 = vmatmul.msk.f32.vlgmr.msra.gmra.mxu0 %vm110_vm2, %v537_v49 }
 0x965   :  { %v486_v51 = vpop.permute.xlu0 %485 }
 0x966   :  { %v488_v52 = vsel %vm110_vm2, %v481_v50, %v486_v51 }
 0x967   :  { %v490_v53 = vrot.slane %v488_v52, 6 }
 0x969   :  { %1051 = vmatmul.msk.f32.vlgmr.msrb.gmra.mxu2 %vm162_vm3, %v490_v53 }
 0x96a   :  { %933 = vmatpush.msrb.mxu2 %v1320_v24 }
 0x96c   :  { %934 = vmatpush.msrb.mxu2 %v1322_v25 }
 0x96e   :  { %935 = vmatpush.msrb.mxu2 %v1326_v26 }
 0x970   :  { %936 = vmatpush.msrb.mxu2 %v1331_v27 }
 0x972   :  { %937 = vmatpush.msrb.mxu2 %v1336_v28 }
 0x974   :  { %938 = vmatpush.msrb.mxu2 %v1341_v29 }
 0x976   :  { %939 = vmatpush.msrb.mxu2 %v1346_v30 }
 0x978   :  { %940 = vmatpush.msrb.mxu2 %v1356_v33 }
 0x9de   :  { %v557_v55 = vpop.f32.mrf.mxu0 }
 0x9df   :  { %v560_v24 = vadd.f32 %v557_v55, %v1488_v54 }
 0x9e1   :  { %1115 = vtanh.f32 %v560_v24  ;;  %v561_v33 = vmul.f32 0.5, %v560_v24 }
 0x9e7   :  { %v1116_v25 = vpop.eup %1115 }
 0x9e8   :  { %571 = vrot.lane.b32.xlu1 %v1116_v25, %s1199_s12 }
 0x9ec   :  { %v510_v26 = vpop.f32.mrf.mxu2 }
 0x9ed   :  { %v511_v27 = vadd.f32 %v1387_v36, %v510_v26 }
 0x9ef   :  { %1117 = vtanh.f32 %v511_v27  ;;  %v513_v29 = vmul.f32 0.5, %v511_v27 }
 0x9f1   :  { %1119 = vtanh.f32 %v513_v29 }
 0x9f2   :  { %1121 = vtanh.f32 %v561_v33 }
 0x9f5   :  { %v1118_v28 = vpop.eup %1117 }
 0x9f6   :  { %520 = vrot.lane.b32.xlu2 %v1118_v28, %s1199_s12 }
 0x9f7   :  { %v1120_v30 = vpop.eup %1119 }
 0x9f8   :  { %v515_v8 = vmul.f32 0.5, %v1120_v30  ;;  %v1122_v59 = vpop.eup %1121 }
 0x9f9   :  { %v563_v60 = vmul.f32 0.5, %v1122_v59 }
 0x9fa   :  { %v516_v19 = vadd.f32 0.5, %v515_v8 }
 0x9fb   :  { %v564_v61 = vadd.f32 0.5, %v563_v60 }
 0x9fc   :  { %v518_v0 = vmul.f32 %v516_v19, %v418_v35 }
 0x9fd   :  { %v569_v1 = vmul.f32 %v567_v4, %v564_v61 }
 0xa50   :  { %v521_v56 = vpop.permute.xlu2 %520 }
 0xa51   :  { %v523_v57 = vmul.f32 %v521_v56, %v516_v19 }
 0xa53   :  { %525 = vrot.lane.b32.xlu1 %v523_v57, %s1200_s3 }
 0xa5a   :  { %v572_v62 = vpop.permute.xlu1 %571 }
 0xa5b   :  { %v574_v63 = vmul.f32 %v572_v62, %v564_v61 }
 0xa5d   :  { %576 = vrot.lane.b32.xlu0 %v574_v63, %s1200_s3 }
 0xac5   :  { %v526_v58 = vpop.permute.xlu1 %525 }
 0xac6   :  { %v528_v3 = vadd.f32 %v526_v58, %v518_v0 }
 0xac8   :  { %1123 = vtanh.f32 %v528_v3 }
 0xace   :  { %v1124_v7 = vpop.eup %1123 }
 0xacf   :  { %531 = vrot.lane.b32.xlu0 %v1124_v7, %s1199_s12  ;;  %v577_v2 = vpop.permute.xlu0 %576 }
 0xad0   :  { %v579_v9 = vadd.f32 %v577_v2, %v569_v1 }
 0xad2   :  { %1125 = vtanh.f32 %v579_v9  ;;  %v672_v45 = vrot.slane %v579_v9, 6 }
 0xad8   :  { %v1126_v5 = vpop.eup %1125 }
 0xad9   :  { %582 = vrot.lane.b32.xlu2 %v1126_v5, %s1199_s12 }
 0xb33   :  { %v583_v11 = vpop.permute.xlu2 %582 }
 0xb34   :  { %v585_v6 = vmul.f32 %v583_v11, %v564_v61 }
 0xb36   :  { %587 = vrot.lane.b32.xlu1 %v585_v6, %s1200_s3 }
 0xb41   :  { %v532_v12 = vpop.permute.xlu0 %531 }
 0xb42   :  { %v534_v13 = vmul.f32 %v532_v12, %v516_v19 }
 0xb44   :  { %591 = vrot.lane.b32.xlu2 %v534_v13, %s1199_s12 }
 0xb9e   :  { %v592_v14 = vpop.permute.xlu2 %591 }
 0xba8   :  { %v588_v15 = vpop.permute.xlu1 %587 }
 0xba9   :  { %v594_v16 = vsel %vm110_vm2, %v588_v15, %v592_v14  ;;  %1054 = vmatmul.msk.f32.vlgmr.msra.gmra.mxu3 %vm110_vm2, %v588_v15 }
 0xbaa   :  { %1053 = vmatmul.msk.f32.vlgmr.msrb.gmra.mxu1 %vm162_vm3, %v594_v16 }
 0xc27   :  { %v615_v17 = vpop.f32.mrf.mxu1 }
 0xc28   :  { %v616_v18 = vadd.f32 %v1387_v36, %v615_v17 }
 0xc2a   :  { %1127 = vtanh.f32 %v616_v18  ;;  %v618_v31 = vmul.f32 0.5, %v616_v18 }
 0xc2c   :  { %v659_v20 = vpop.f32.mrf.mxu3 }
 0xc2d   :  { %v663_v10 = vrot.slane %v659_v20, 6 }
 0xc2f   :  { %v665_v21 = vadd.f32 %v663_v10, %v1488_v54 }
 0xc30   :  { %v1128_v22 = vpop.eup %1127 }
 0xc31   :  { %1129 = vtanh.f32 %v665_v21  ;;  %625 = vrot.lane.b32.xlu1 %v1128_v22, %s1199_s12  ;;  %v666_v32 = vmul.f32 0.5, %v665_v21 }
 0xc32   :  { %1131 = vtanh.f32 %v618_v31 }
 0xc33   :  { %1133 = vtanh.f32 %v666_v32 }
 0xc37   :  { %v1130_v23 = vpop.eup %1129 }
 0xc38   :  { %676 = vrot.lane.b32.xlu0 %v1130_v23, %s1199_s12  ;;  %v1132_v34 = vpop.eup %1131 }
 0xc39   :  { %v620_v35 = vmul.f32 0.5, %v1132_v34  ;;  %v1134_v37 = vpop.eup %1133 }
 0xc3a   :  { %v668_v41 = vmul.f32 0.5, %v1134_v37 }
 0xc3b   :  { %v621_v38 = vadd.f32 0.5, %v620_v35 }
 0xc3c   :  { %v669_v42 = vadd.f32 0.5, %v668_v41 }
 0xc3d   :  { %v623_v50 = vmul.f32 %v621_v38, %v528_v3 }
 0xc3e   :  { %v674_v46 = vmul.f32 %v672_v45, %v669_v42 }
 0xca3   :  { %v626_v39 = vpop.permute.xlu1 %625 }
 0xca4   :  { %v628_v40 = vmul.f32 %v626_v39, %v621_v38 }
 0xca6   :  { %630 = vrot.lane.b32.xlu0 %v628_v40, %s1200_s3 }
 0xcaa   :  { %v677_v43 = vpop.permute.xlu0 %676 }
 0xcab   :  { %v679_v44 = vmul.f32 %v677_v43, %v669_v42 }
 0xcad   :  { %681 = vrot.lane.b32.xlu2 %v679_v44, %s1200_s3 }
 0xd07   :  { %v682_v47 = vpop.permute.xlu2 %681 }
 0xd08   :  { %v684_v48 = vadd.f32 %v682_v47, %v674_v46 }
 0xd0a   :  { %1135 = vtanh.f32 %v684_v48  ;;  %v782_v17 = vrot.slane %v684_v48, 6 }
 0xd10   :  { %v1136_v49 = vpop.eup %1135 }
 0xd11   :  { %687 = vrot.lane.b32.xlu1 %v1136_v49, %s1199_s12 }
 0xd18   :  { %v631_v51 = vpop.permute.xlu0 %630 }
 0xd19   :  { %v633_v52 = vadd.f32 %v631_v51, %v623_v50 }
 0xd1b   :  { %1137 = vtanh.f32 %v633_v52 }
 0xd21   :  { %v1138_v53 = vpop.eup %1137 }
 0xd22   :  { %636 = vrot.lane.b32.xlu2 %v1138_v53, %s1199_s12 }
 0xd7c   :  { %v637_v55 = vpop.permute.xlu2 %636 }
 0xd7d   :  { %v639_v24 = vmul.f32 %v637_v55, %v621_v38 }
 0xd7f   :  { %v696_v25 = vrot.slane %v639_v24, 6 }
 0xd81   :  { %697 = vrot.lane.b32.xlu2 %v696_v25, %s1199_s12 }
 0xd83   :  { %v688_v26 = vpop.permute.xlu1 %687 }
 0xd84   :  { %v690_v27 = vmul.f32 %v688_v26, %v669_v42 }
 0xd86   :  { %v747_v28 = vrot.slane %v690_v27, 2  ;;  %692 = vrot.lane.b32.xlu1 %v690_v27, %s1200_s3 }
 0xd88   :  { %748 = vrot.lane.b32.xlu0 %v747_v28, %s1200_s3 }
 0xddb   :  { %v698_v29 = vpop.permute.xlu2 %697 }
 0xdf8   :  { %v693_v30 = vpop.permute.xlu1 %692 }
 0xdf9   :  { %v700_v33 = vsel %vm110_vm2, %v693_v30, %v698_v29 }
 0xdfa   :  { %v702_v8 = vrot.slane %v700_v33, 2  ;;  %v749_v19 = vpop.permute.xlu0 %748 }
 0xdfb   :  { %1056 = vmatmul.msk.f32.vlgmr.msra.gmra.mxu2 %vm110_vm2, %v749_v19 }
 0xdfc   :  { %1055 = vmatmul.msk.f32.vlgmr.msrb.gmra.mxu0 %vm162_vm3, %v702_v8 }
 0xe79   :  { %v722_v56 = vpop.f32.mrf.mxu0 }
 0xe7a   :  { %v723_v57 = vadd.f32 %v1387_v36, %v722_v56 }
 0xe7c   :  { %1139 = vtanh.f32 %v723_v57  ;;  %v725_v0 = vmul.f32 0.5, %v723_v57 }
 0xe7e   :  { %v769_v59 = vpop.f32.mrf.mxu2 }
 0xe7f   :  { %v773_v60 = vrot.slane %v769_v59, 4 }
 0xe81   :  { %v775_v61 = vadd.f32 %v773_v60, %v1488_v54 }
 0xe82   :  { %v1140_v62 = vpop.eup %1139 }
 0xe83   :  { %1141 = vtanh.f32 %v775_v61  ;;  %732 = vrot.lane.b32.xlu0 %v1140_v62, %s1199_s12  ;;  %v776_v58 = vmul.f32 0.5, %v775_v61 }
 0xe84   :  { %1143 = vtanh.f32 %v725_v0 }
 0xe85   :  { %1145 = vtanh.f32 %v776_v58 }
 0xe89   :  { %v1142_v63 = vpop.eup %1141 }
 0xe8a   :  { %786 = vrot.lane.b32.xlu1 %v1142_v63, %s1199_s12  ;;  %v1144_v3 = vpop.eup %1143 }
 0xe8b   :  { %v727_v4 = vmul.f32 0.5, %v1144_v3  ;;  %v1146_v7 = vpop.eup %1145 }
 0xe8c   :  { %v778_v5 = vmul.f32 0.5, %v1146_v7 }
 0xe8d   :  { %v728_v1 = vadd.f32 0.5, %v727_v4 }
 0xe8e   :  { %v779_v11 = vadd.f32 0.5, %v778_v5 }
 0xe8f   :  { %v730_v13 = vmul.f32 %v728_v1, %v633_v52 }
 0xe90   :  { %v784_v18 = vmul.f32 %v782_v17, %v779_v11 }
 0xef5   :  { %v733_v2 = vpop.permute.xlu0 %732 }
 0xef6   :  { %v735_v9 = vmul.f32 %v733_v2, %v728_v1 }
 0xef8   :  { %737 = vrot.lane.b32.xlu2 %v735_v9, %s1200_s3 }
 0xefc   :  { %v787_v6 = vpop.permute.xlu1 %786 }
 0xefd   :  { %v789_v12 = vmul.f32 %v787_v6, %v779_v11 }
 0xeff   :  { %791 = vrot.lane.b32.xlu0 %v789_v12, %s1200_s3 }
 0xf52   :  { %v738_v14 = vpop.permute.xlu2 %737 }
 0xf53   :  { %v740_v15 = vadd.f32 %v738_v14, %v730_v13 }
 0xf55   :  { %1147 = vtanh.f32 %v740_v15 }
 0xf5b   :  { %v1148_v16 = vpop.eup %1147 }
 0xf5c   :  { %743 = vrot.lane.b32.xlu1 %v1148_v16, %s1199_s12 }
 0xf71   :  { %v792_v20 = vpop.permute.xlu0 %791 }
 0xf72   :  { %v794_v10 = vadd.f32 %v792_v20, %v784_v18 }
 0xf74   :  { %1149 = vtanh.f32 %v794_v10  ;;  %v892_v29 = vrot.slane %v794_v10, 6  ;;  %v970_v10 = vld [vmem:[%s1576_s6 + $0x10] sm:$0xff] }
 0xf7a   :  { %v1150_v21 = vpop.eup %1149 }
 0xf7b   :  { %797 = vrot.lane.b32.xlu2 %v1150_v21, %s1199_s12  ;;  %v969_v21 = vld [vmem:[%s1576_s6 + $0x8] sm:$0xff] }
 0xfce   :  { %v744_v22 = vpop.permute.xlu1 %743 }
 0xfcf   :  { %v746_v23 = vmul.f32 %v744_v22, %v728_v1  ;;  %v968_v22 = vld [vmem:[%s1576_s6] sm:$0xff] }
 0xfd1   :  { %v806_v31 = vrot.slane %v746_v23, 4 }
 0xfd3   :  { %807 = vrot.lane.b32.xlu1 %v806_v31, %s1199_s12 }
 0xfd5   :  { %v798_v32 = vpop.permute.xlu2 %797 }
 0xfd6   :  { %v800_v34 = vmul.f32 %v798_v32, %v779_v11 }
 0xfd8   :  { %v857_v35 = vrot.slane %v800_v34, 4  ;;  %802 = vrot.lane.b32.xlu0 %v800_v34, %s1200_s3  ;;  %v1002_v34 = vld [vmem:[%s1578_s8] sm:$0x1f] }
 0xfd9   :  { %1061 = vmatpush.msk.msrb.mxu1 %vm1011_vm4, %v1002_v34 }
 0xfda   :  { %858 = vrot.lane.b32.xlu2 %v857_v35, %s1200_s3 }
0x1034   :  { %v859_v37 = vpop.permute.xlu2 %858 }
0x1035   :  { %1058 = vmatmul.msk.f32.vlgmr.msra.gmra.mxu1 %vm110_vm2, %v859_v37  ;;  %v1071_v37 = vld [vmem:[%s1577_s7] ss:$0 sm:$0xff] }
0x1045   :  { %v808_v38 = vpop.permute.xlu1 %807 }
0x104a   :  { %v803_v39 = vpop.permute.xlu0 %802 }
0x104b   :  { %v810_v40 = vsel %vm110_vm2, %v803_v39, %v808_v38 }
0x104c   :  { %v812_v41 = vrot.slane %v810_v40, 4 }
0x104e   :  { %1057 = vmatmul.msk.f32.vlgmr.msrb.gmra.mxu3 %vm162_vm3, %v812_v41  ;;  %v1072_v41 = vld [vmem:[#allocation2] ss:$0 sm:$0xff] }
0x10b2   :  { %v879_v42 = vpop.f32.mrf.mxu1 }
0x10b3   :  { %v883_v43 = vrot.slane %v879_v42, 2 }
0x10b5   :  { %v885_v44 = vadd.f32 %v883_v43, %v1488_v54 }
0x10b7   :  { %1151 = vtanh.f32 %v885_v44  ;;  %v886_v49 = vmul.f32 0.5, %v885_v44 }
0x10bd   :  { %v1152_v45 = vpop.eup %1151 }
0x10be   :  { %896 = vrot.lane.b32.xlu1 %v1152_v45, %s1199_s12 }
0x10d1   :  { %v832_v46 = vpop.f32.mrf.mxu3 }
0x10d2   :  { %v833_v47 = vadd.f32 %v1387_v36, %v832_v46 }
0x10d4   :  { %1153 = vtanh.f32 %v833_v47  ;;  %v835_v54 = vmul.f32 0.5, %v833_v47 }
0x10d5   :  { %1155 = vtanh.f32 %v886_v49 }
0x10d6   :  { %1157 = vtanh.f32 %v835_v54 }
0x10da   :  { %v1154_v48 = vpop.eup %1153 }
0x10db   :  { %842 = vrot.lane.b32.xlu0 %v1154_v48, %s1199_s12  ;;  %v1156_v50 = vpop.eup %1155 }
0x10dc   :  { %v888_v51 = vmul.f32 0.5, %v1156_v50  ;;  %v1158_v24 = vpop.eup %1157 }
0x10dd   :  { %v837_v25 = vmul.f32 0.5, %v1158_v24 }
0x10de   :  { %v889_v52 = vadd.f32 0.5, %v888_v51 }
0x10df   :  { %v838_v26 = vadd.f32 0.5, %v837_v25 }
0x10e0   :  { %v894_v30 = vmul.f32 %v892_v29, %v889_v52 }
0x10e1   :  { %v840_v19 = vmul.f32 %v838_v26, %v740_v15 }
0x1130   :  { %v897_v53 = vpop.permute.xlu1 %896 }
0x1131   :  { %v899_v55 = vmul.f32 %v897_v53, %v889_v52 }
0x1133   :  { %901 = vrot.lane.b32.xlu0 %v899_v55, %s1200_s3 }
0x114d   :  { %v843_v27 = vpop.permute.xlu0 %842 }
0x114e   :  { %v845_v28 = vmul.f32 %v843_v27, %v838_v26 }
0x1150   :  { %847 = vrot.lane.b32.xlu2 %v845_v28, %s1200_s3 }
0x11a5   :  { %v902_v33 = vpop.permute.xlu0 %901 }
0x11a6   :  { %v904_v8 = vadd.f32 %v902_v33, %v894_v30 }
0x11a8   :  { %1159 = vtanh.f32 %v904_v8 }
0x11aa   :  { %v848_v56 = vpop.permute.xlu2 %847 }
0x11ab   :  { %v850_v57 = vadd.f32 %v848_v56, %v840_v19 }
0x11ad   :  { %1161 = vtanh.f32 %v850_v57 }
0x11ae   :  { %v1160_v59 = vpop.eup %1159 }
0x11af   :  { %907 = vrot.lane.b32.xlu2 %v1160_v59, %s1199_s12 }
0x11b3   :  { %v1162_v60 = vpop.eup %1161 }
0x11b4   :  { %853 = vrot.lane.b32.xlu1 %v1162_v60, %s1199_s12 }
0x1209   :  { %v908_v61 = vpop.permute.xlu2 %907 }
0x120a   :  { %v910_v62 = vmul.f32 %v908_v61, %v889_v52 }
0x120c   :  { %912 = vrot.lane.b32.xlu0 %v910_v62, %s1200_s3 }
0x1226   :  { %v854_v63 = vpop.permute.xlu1 %853 }
0x1227   :  { %v856_v0 = vmul.f32 %v854_v63, %v838_v26 }
0x1229   :  { %v916_v58 = vrot.slane %v856_v0, 2 }
0x122b   :  { %917 = vrot.lane.b32.xlu1 %v916_v58, %s1199_s12 }
0x127e   :  { %v913_v3 = vpop.permute.xlu0 %912 }
0x129d   :  { %v918_v4 = vpop.permute.xlu1 %917 }
0x129e   :  { %v920_v7 = vsel %vm110_vm2, %v913_v3, %v918_v4 }
0x129f   :  { %v922_v1 = vrot.slane %v920_v7, 6 }
0x12a1   :  { %1059 = vmatmul.msk.f32.vlgmr.msrb.gmra.mxu2 %vm162_vm3, %v922_v1 }
0x1324   :  { %v942_v2 = vpop.f32.mrf.mxu2 }
0x1325   :  { %v943_v9 = vadd.f32 %v1387_v36, %v942_v2  ;;  %v971_v36 = vld [vmem:[%s1576_s6 + $0x18] sm:$0xff] }
0x1326   :  { %993 = vmatpush.msra.mxu0 %v971_v36 }
0x1327   :  { %1163 = vtanh.f32 %v943_v9  ;;  %v945_v11 = vmul.f32 0.5, %v943_v9 }
0x1328   :  { %994 = vmatpush.msra.mxu0 %v970_v10 }
0x1329   :  { %1165 = vtanh.f32 %v945_v11 }
0x132a   :  { %995 = vmatpush.msra.mxu0 %v969_v21 }
0x132c   :  { %996 = vmatpush.msra.mxu0 %v968_v22 }
0x132d   :  { %v1164_v5 = vpop.eup %1163 }
0x132e   :  { %952 = vrot.lane.b32.xlu2 %v1164_v5, %s1199_s12 }
0x132f   :  { %v1166_v6 = vpop.eup %1165 }
0x1330   :  { %v947_v12 = vmul.f32 0.5, %v1166_v6 }
0x1332   :  { %v948_v13 = vadd.f32 0.5, %v947_v12 }
0x1334   :  { %v950_v16 = vmul.f32 %v948_v13, %v850_v57 }
0x1388   :  { %v953_v14 = vpop.permute.xlu2 %952 }
0x1389   :  { %v955_v15 = vmul.f32 %v953_v14, %v948_v13 }
0x138b   :  { %957 = vrot.lane.b32.xlu0 %v955_v15, %s1200_s3 }
0x13fd   :  { %v958_v17 = vpop.permute.xlu0 %957 }
0x13fe   :  { %v960_v18 = vadd.f32 %v958_v17, %v950_v16 }
0x1400   :  { %1167 = vtanh.f32 %v960_v18 }
0x1406   :  { %v1168_v20 = vpop.eup %1167 }
0x1407   :  { %963 = vrot.lane.b32.xlu1 %v1168_v20, %s1199_s12 }
0x1479   :  { %v964_v23 = vpop.permute.xlu1 %963 }
0x147a   :  { %v966_v31 = vmul.f32 %v964_v23, %v948_v13 }
0x147c   :  { %v967_v32 = vmax.f32 %v966_v31, 0.0 }
0x147e   :  { %977 = vrot.lane.b32.xlu2 %v967_v32, %s1200_s3 }
0x14d8   :  { %v978_v35 = vpop.permute.xlu2 %977 }
0x14d9   :  { %1060 = vmatmul.msk.f32.vlgmr.msra.gmra.mxu0 %vm110_vm2, %v978_v35 }
0x1556   :  { %v998_v38 = vpop.f32.mrf.mxu0 }
0x1557   :  { %v999_v39 = vadd.f32 %v1071_v37, %v998_v38 }
0x1559   :  { %v1001_v40 = vmax.f32 %v999_v39, 0.0 }
0x155b   :  { %1062 = vmatmul.msk.f32.vlgmr.msrb.gmra.mxu1 %vm1007_vm5, %v1001_v40 }
0x15d8   :  { %v1032_v42 = vpop.f32.mrf.mxu1 }
0x15d9   :  { %v1033_v43 = vadd.f32 %v1072_v41, %v1032_v42 }
0x15db   :  { %1036 = vst.msk [vmem:[%s1580_s10] sm:$0x3] %vm1035_vm6, %v1033_v43 }
0x15dc   :  { %1041 = vsyncpa [#allocation4], 1 }

</bundles_post_ra>
